<compile_context>
chip_gen: v7x
topology: tpu7x:2x2x1
jax: 0.10.0
libtpu: 0.0.40
codegen_flags: <defaults>
</compile_context>

<pallas_src>
import functools

import jax
import jax.numpy as jnp
import numpy as np
from jax.experimental import pallas as pl
from jax.experimental.pallas import tpu as pltpu

IN_CH = 4                 # model input channels
CIN_PAD = 8               # input channels zero-padded to a full sublane group
C0, C1, C2, C4 = 8, 16, 16, 16
H = W = 16                # input spatial size
HP = WP = H + 2           # zero-padded spatial size (k=3, p=1)
PITCH = WP                # lane pitch of flattened padded images (18)
H1 = W1 = H // 2          # spatial size after the stride-2 layer (8)
L0 = (H - 1) * PITCH + W  # 286: full-width conv length covering all valid pixels
N1 = 2 * (H1 - 1) * PITCH + 2 * (W1 - 1) + 1   # 267: dense rows covering kept taps
A1_LEFT = PITCH + 1       # 19: zero lanes (top pad row + left pad) before the slab
BN_EPS = 1e-3             # init_param sets BatchNorm2d eps = 0.001

# (from_, c1, c2, k, stride, pad) for conv layers; layer 3 is Concat([-1, 1]).
_CONV_CFG = [
    (-1, IN_CH, 8, 3, 1, 1),   # 0
    (-1, 8, 16, 3, 2, 1),      # 1
    (-1, 16, 16, 1, 1, 0),     # 2
    None,                      # 3: Concat([-1, 1], dim=1)
    (-1, 32, 16, 1, 1, 0),     # 4
]

# Lane mask zeroing the 2 junk columns per padded row of the full-width conv.
_MASK = ((np.arange(L0) % PITCH) < W).astype(np.float32).reshape(1, L0)

# 0/1 decimation matrix: dense lane q = 2*ho*PITCH + 2*wo  ->  output column 8*ho+wo.
_SEL = np.zeros((N1, H1 * W1), np.float32)
for _ho in range(H1):
    for _wo in range(W1):
        _SEL[2 * _ho * PITCH + 2 * _wo, _ho * W1 + _wo] = 1.0


# ----------------------------- fused Pallas kernel ---------------------------
def _yaml_model_kernel(x_ref, mask_ref, sel_ref,
                       w0_ref, b0_ref, w1_ref, b1_ref,
                       w2_ref, b2_ref, w4a_ref, w4b_ref, b4_ref,
                       o_ref):
    """Whole network, all images, channel-major (channels x flattened spatial).

    x_ref   : (n, 8, 324)  padded 18x18 input, channels padded 4->8, spatial on lanes
    mask_ref: (1, 286)     1.0 on valid columns, 0.0 on the 2 junk columns per row
    sel_ref : (267, 64)    0/1 stride-2 decimation matrix
    w0_ref  : (8, 72)      layer-0 K-stacked taps (BN scale folded in)
    w1_ref  : (16, 72)     layer-1 K-stacked taps
    w2/4a/4b: (16, 16)     1x1 weights (layer-4 split for the two concat sources)
    b*_ref  : (c, 1)       folded BN biases
    o_ref   : (n, 16, 64)  output, channel-major (reshapes to NCHW for free)
    """
    f32 = jnp.float32
    mask = mask_ref[...]                                  # (1, 286)
    sel = sel_ref[...]                                    # (267, 64)
    n = o_ref.shape[0]

    for b in range(n):                                    # static unroll over batch
        xb = x_ref[b]                                     # (8, 324)

        # ---- layer 0: Conv 3x3 s1 p1 (4 -> 8) as ONE K-stacked GEMM --------------
        x0 = jnp.concatenate(
            [xb[:, dy * PITCH + dx: dy * PITCH + dx + L0]
             for dy in range(3) for dx in range(3)], axis=0)          # (72, 286)
        y0 = jnp.dot(w0_ref[...], x0, preferred_element_type=f32) + b0_ref[...]
        y0 = y0 * jax.nn.sigmoid(y0)                      # SiLU, (8, 286)
        y0 = y0 * mask                                    # zero junk columns

        # ---- padded layer-1 input built as a value (zero border, no scratch) -----
        a1 = jnp.concatenate(
            [jnp.zeros((C0, A1_LEFT), f32), y0], axis=1)              # (8, 305)

        # ---- layer 1: Conv 3x3 s2 p1 (8 -> 16): dense GEMM + matmul decimation ---
        x1s = jnp.concatenate(
            [a1[:, dy * PITCH + dx: dy * PITCH + dx + N1]
             for dy in range(3) for dx in range(3)], axis=0)          # (72, 267)
        acc1 = jnp.dot(w1_ref[...], x1s, preferred_element_type=f32)  # (16, 267)
        x1 = jnp.dot(acc1, sel, preferred_element_type=f32) + b1_ref[...]   # (16, 64)
        x1 = x1 * jax.nn.sigmoid(x1)

        # ---- layer 2: Conv 1x1 (16 -> 16) ----------------------------------------
        y2 = jnp.dot(w2_ref[...], x1, preferred_element_type=f32) + b2_ref[...]
        y2 = y2 * jax.nn.sigmoid(y2)

        # ---- layer 3 Concat([-1, 1]) + layer 4 Conv 1x1 (32 -> 16) ---------------
        # cat(y2, x1) @ W4  ==  W4a @ y2 + W4b @ x1   (concat never materialized)
        y4 = (jnp.dot(w4a_ref[...], y2, preferred_element_type=f32)
              + jnp.dot(w4b_ref[...], x1, preferred_element_type=f32)
              + b4_ref[...])
        y4 = y4 * jax.nn.sigmoid(y4)
        o_ref[b] = y4.astype(o_ref.dtype)


# ------------------------------ parameter plumbing ---------------------------
def init_params(key):
    params = []
    for cfg in _CONV_CFG:
        if cfg is None:
            params.append(None)
            continue
        _, c1, c2, k, s, p = cfg
        key, wk = jax.random.split(key)
        w = jax.random.normal(wk, (c2, c1, k, k), jnp.float32) / np.sqrt(c1 * k * k)
        # eval-mode BN with gamma=1, beta=0, running_mean=0, running_var=1
        scale = jnp.ones((c2,), jnp.float32) / jnp.sqrt(1.0 + BN_EPS)
        bias = jnp.zeros((c2,), jnp.float32)
        params.append({"w": w, "scale": scale, "bias": bias,
                       "stride": s, "pad": p})
    return params


def fold_params(params):
    """Fold BN scale into conv weights; build K-stacked tap matrices (host, once)."""
    def scaled(p):
        return (p["w"] * p["scale"][:, None, None, None]).astype(jnp.float32)

    def tap_stack(p, cin_pad):
        w = scaled(p)                                    # (c2, c1, 3, 3)
        c2, c1 = w.shape[:2]
        out = jnp.zeros((c2, 9 * cin_pad), jnp.float32)
        for t in range(9):
            dy, dx = divmod(t, 3)
            out = out.at[:, t * cin_pad: t * cin_pad + c1].set(w[:, :, dy, dx])
        return out

    def mat1x1(p):
        return scaled(p)[:, :, 0, 0]                     # (c2, c1)

    def bias(p):
        return p["bias"].reshape(-1, 1).astype(jnp.float32)

    w4 = mat1x1(params[4])                               # (16, 32), cat = [x2, x1]
    return dict(
        w0=tap_stack(params[0], CIN_PAD), b0=bias(params[0]),   # (8, 72)
        w1=tap_stack(params[1], C0), b1=bias(params[1]),        # (16, 72)
        w2=mat1x1(params[2]), b2=bias(params[2]),
        w4a=w4[:, :C2], w4b=w4[:, C2:], b4=bias(params[4]),
    )


# --------------------------------- forward -----------------------------------
def yaml_model_forward(folded, x_nchw):
    """Mirrors YamlModel.forward for the architecture above (eval mode)."""
    if x_nchw.dtype == jnp.uint8:
        x_nchw = x_nchw.astype(jnp.float32) / 255.0
    x_nchw = x_nchw.astype(jnp.float32)
    n = x_nchw.shape[0]

    # NCHW is already channel-major: pad channels 4->8, spatial by 1, flatten.
    xp = jnp.pad(x_nchw, ((0, 0), (0, CIN_PAD - IN_CH), (1, 1), (1, 1)))
    xf = xp.reshape(n, CIN_PAD, HP * WP)                 # (n, 8, 324)

    mask = jnp.asarray(_MASK)
    sel = jnp.asarray(_SEL)

    def _full(shape):
        rank = len(shape)
        return pl.BlockSpec(shape, lambda i, _r=rank: (0,) * _r)

    out = pl.pallas_call(
        _yaml_model_kernel,
        out_shape=jax.ShapeDtypeStruct((n, C4, H1 * W1), jnp.float32),
        grid_spec=pltpu.PrefetchScalarGridSpec(
            num_scalar_prefetch=0,
            grid=(1,),                                   # batch folded into the body
            in_specs=[
                _full((n, CIN_PAD, HP * WP)),
                _full((1, L0)),
                _full((N1, H1 * W1)),
                _full((C0, 9 * CIN_PAD)), _full((C0, 1)),
                _full((C1, 9 * C0)), _full((C1, 1)),
                _full((C2, C1)), _full((C2, 1)),
                _full((C4, C2)), _full((C4, C1)), _full((C4, 1)),
            ],
            out_specs=_full((n, C4, H1 * W1)),
        ),
        compiler_params=pltpu.CompilerParams(
            dimension_semantics=("arbitrary",)),
    )(xf, mask, sel,
      folded["w0"], folded["b0"], folded["w1"], folded["b1"],
      folded["w2"], folded["b2"], folded["w4a"], folded["w4b"], folded["b4"])

    # (n, 16, 64) channel-major -> NCHW (n, 16, 8, 8): pure reshape, no transpose.
    return out.reshape(n, C4, H1, W1)


# ------------------------------ pure-JAX reference ---------------------------
def _reference_forward(params, x_nchw):
    x = x_nchw
    if x.dtype == jnp.uint8:
        x = x.astype(jnp.float32) / 255.0
    x = jnp.transpose(x.astype(jnp.float32), (0, 2, 3, 1))

    def conv(x, p):
        y = jax.lax.conv_general_dilated(
            x, jnp.transpose(p["w"], (2, 3, 1, 0)),
            window_strides=(p["stride"], p["stride"]),
            padding=((p["pad"], p["pad"]), (p["pad"], p["pad"])),
            dimension_numbers=("NHWC", "HWIO", "NHWC"),
            precision=jax.lax.Precision.HIGHEST)
        y = y * p["scale"] + p["bias"]
        return y * jax.nn.sigmoid(y)

    x0 = conv(x, params[0])
    x1 = conv(x0, params[1])
    x2 = conv(x1, params[2])
    xc = jnp.concatenate([x2, x1], axis=-1)       # Concat(from=[-1, 1], dim=1)
    x4 = conv(xc, params[4])
    return jnp.transpose(x4, (0, 3, 1, 2))


if __name__ == "__main__":
    key = jax.random.PRNGKey(0)
    pkey, xkey = jax.random.split(key)
    params = init_params(pkey)
    folded = fold_params(params)                  # BN folding done once, outside jit

    x = jax.random.normal(xkey, (2, IN_CH, 16, 16), jnp.float32)    # NCHW

    fwd = jax.jit(functools.partial(yaml_model_forward, folded))
    out = fwd(x)
    jax.block_until_ready(out)
    assert out.shape == (2, 16, 8, 8), out.shape

    ref = _reference_forward(params, x)
    err = float(jnp.max(jnp.abs(out - ref)))
    # Tightened vs v1 (5e-2); both sides are f32 paths, margin covers MXU pass modes.
    assert err < 5e-3, f"max |kernel - reference| = {err}"

    print("KERNEL_OK")
</pallas_src>

<mosaic_0001>
module attributes {stable_mosaic.version = 11 : i64} {
  func.func @_yaml_model_kernel(%arg0: i32, %arg1: memref<2x8x324xf32, #tpu.memory_space<vmem>>, %arg2: memref<1x286xf32, #tpu.memory_space<vmem>>, %arg3: memref<267x64xf32, #tpu.memory_space<vmem>>, %arg4: memref<8x72xf32, #tpu.memory_space<vmem>>, %arg5: memref<8x1xf32, #tpu.memory_space<vmem>>, %arg6: memref<16x72xf32, #tpu.memory_space<vmem>>, %arg7: memref<16x1xf32, #tpu.memory_space<vmem>>, %arg8: memref<16x16xf32, #tpu.memory_space<vmem>>, %arg9: memref<16x1xf32, #tpu.memory_space<vmem>>, %arg10: memref<16x16xf32, #tpu.memory_space<vmem>>, %arg11: memref<16x16xf32, #tpu.memory_space<vmem>>, %arg12: memref<16x1xf32, #tpu.memory_space<vmem>>, %arg13: memref<2x16x64xf32, #tpu.memory_space<vmem>>) attributes {dimension_semantics = [#tpu.dimension_semantics<arbitrary>], iteration_bounds = array<i64: 1>, scalar_prefetch = 0 : i64, scratch_operands = 0 : i64, tpu.core_type = #tpu.core_type<tc>, window_params = [{pipeline_mode = #tpu.pipeline_mode<synchronous>, transform_indices = @transform_0, window_bounds = array<i64: 2, 8, 324>}, {pipeline_mode = #tpu.pipeline_mode<synchronous>, transform_indices = @transform_1, window_bounds = array<i64: 1, 286>}, {pipeline_mode = #tpu.pipeline_mode<synchronous>, transform_indices = @transform_2, window_bounds = array<i64: 267, 64>}, {pipeline_mode = #tpu.pipeline_mode<synchronous>, transform_indices = @transform_3, window_bounds = array<i64: 8, 72>}, {pipeline_mode = #tpu.pipeline_mode<synchronous>, transform_indices = @transform_4, window_bounds = array<i64: 8, 1>}, {pipeline_mode = #tpu.pipeline_mode<synchronous>, transform_indices = @transform_5, window_bounds = array<i64: 16, 72>}, {pipeline_mode = #tpu.pipeline_mode<synchronous>, transform_indices = @transform_6, window_bounds = array<i64: 16, 1>}, {pipeline_mode = #tpu.pipeline_mode<synchronous>, transform_indices = @transform_7, window_bounds = array<i64: 16, 16>}, {pipeline_mode = #tpu.pipeline_mode<synchronous>, transform_indices = @transform_8, window_bounds = array<i64: 16, 1>}, {pipeline_mode = #tpu.pipeline_mode<synchronous>, transform_indices = @transform_9, window_bounds = array<i64: 16, 16>}, {pipeline_mode = #tpu.pipeline_mode<synchronous>, transform_indices = @transform_10, window_bounds = array<i64: 16, 16>}, {pipeline_mode = #tpu.pipeline_mode<synchronous>, transform_indices = @transform_11, window_bounds = array<i64: 16, 1>}, {pipeline_mode = #tpu.pipeline_mode<synchronous>, transform_indices = @transform_12, window_bounds = array<i64: 2, 16, 64>}]} {
    %c0 = arith.constant 0 : index
    %c0_0 = arith.constant 0 : index
    %0 = vector.load %arg2[%c0, %c0_0] : memref<1x286xf32, #tpu.memory_space<vmem>>, vector<1x286xf32>
    %c0_1 = arith.constant 0 : index
    %c0_2 = arith.constant 0 : index
    %1 = vector.load %arg3[%c0_1, %c0_2] : memref<267x64xf32, #tpu.memory_space<vmem>>, vector<267x64xf32>
    %c0_3 = arith.constant 0 : index
    %c0_4 = arith.constant 0 : index
    %c0_5 = arith.constant 0 : index
    %2 = vector.load %arg1[%c0_3, %c0_4, %c0_5] : memref<2x8x324xf32, #tpu.memory_space<vmem>>, vector<1x8x324xf32>
    %3 = vector.shape_cast %2 : vector<1x8x324xf32> to vector<8x324xf32>
    %4 = vector.extract_strided_slice %3 {offsets = [0, 0], sizes = [8, 286], strides = [1, 1]} : vector<8x324xf32> to vector<8x286xf32>
    %5 = vector.extract_strided_slice %3 {offsets = [0, 1], sizes = [8, 286], strides = [1, 1]} : vector<8x324xf32> to vector<8x286xf32>
    %6 = vector.extract_strided_slice %3 {offsets = [0, 2], sizes = [8, 286], strides = [1, 1]} : vector<8x324xf32> to vector<8x286xf32>
    %7 = vector.extract_strided_slice %3 {offsets = [0, 18], sizes = [8, 286], strides = [1, 1]} : vector<8x324xf32> to vector<8x286xf32>
    %8 = vector.extract_strided_slice %3 {offsets = [0, 19], sizes = [8, 286], strides = [1, 1]} : vector<8x324xf32> to vector<8x286xf32>
    %9 = vector.extract_strided_slice %3 {offsets = [0, 20], sizes = [8, 286], strides = [1, 1]} : vector<8x324xf32> to vector<8x286xf32>
    %10 = vector.extract_strided_slice %3 {offsets = [0, 36], sizes = [8, 286], strides = [1, 1]} : vector<8x324xf32> to vector<8x286xf32>
    %11 = vector.extract_strided_slice %3 {offsets = [0, 37], sizes = [8, 286], strides = [1, 1]} : vector<8x324xf32> to vector<8x286xf32>
    %12 = vector.extract_strided_slice %3 {offsets = [0, 38], sizes = [8, 286], strides = [1, 1]} : vector<8x324xf32> to vector<8x286xf32>
    %13 = tpu.concatenate %4, %5, %6, %7, %8, %9, %10, %11, %12 in 0 : vector<8x286xf32>, vector<8x286xf32>, vector<8x286xf32>, vector<8x286xf32>, vector<8x286xf32>, vector<8x286xf32>, vector<8x286xf32>, vector<8x286xf32>, vector<8x286xf32> -> vector<72x286xf32>
    %c0_6 = arith.constant 0 : index
    %c0_7 = arith.constant 0 : index
    %14 = vector.load %arg4[%c0_6, %c0_7] : memref<8x72xf32, #tpu.memory_space<vmem>>, vector<8x72xf32>
    %cst = arith.constant dense<0.000000e+00> : vector<8x286xf32>
    %15 = tpu.matmul %14, %13, %cst {dimension_numbers = #tpu.dot_dimension_numbers<[1], [0], [0], [1], [0, 0, 1, 1], [], []>} : vector<8x72xf32>, vector<72x286xf32>, vector<8x286xf32> -> vector<8x286xf32>
    %c0_8 = arith.constant 0 : index
    %c0_9 = arith.constant 0 : index
    %16 = vector.load %arg5[%c0_8, %c0_9] : memref<8x1xf32, #tpu.memory_space<vmem>>, vector<8x1xf32>
    %17 = vector.broadcast %16 : vector<8x1xf32> to vector<8x286xf32>
    %18 = arith.addf %15, %17 : vector<8x286xf32>
    %19 = arith.negf %18 : vector<8x286xf32>
    %20 = math.exp %19 : vector<8x286xf32>
    %cst_10 = arith.constant 1.000000e+00 : f32
    %21 = vector.broadcast %cst_10 : f32 to vector<8x286xf32>
    %22 = arith.addf %21, %20 : vector<8x286xf32>
    %23 = arith.divf %21, %22 : vector<8x286xf32>
    %24 = arith.mulf %18, %23 : vector<8x286xf32>
    %25 = vector.broadcast %0 : vector<1x286xf32> to vector<8x286xf32>
    %26 = arith.mulf %24, %25 : vector<8x286xf32>
    %cst_11 = arith.constant 0.000000e+00 : f32
    %27 = vector.broadcast %cst_11 : f32 to vector<8x19xf32>
    %28 = tpu.concatenate %27, %26 in 1 : vector<8x19xf32>, vector<8x286xf32> -> vector<8x305xf32>
    %29 = vector.extract_strided_slice %28 {offsets = [0, 0], sizes = [8, 267], strides = [1, 1]} : vector<8x305xf32> to vector<8x267xf32>
    %30 = vector.extract_strided_slice %28 {offsets = [0, 1], sizes = [8, 267], strides = [1, 1]} : vector<8x305xf32> to vector<8x267xf32>
    %31 = vector.extract_strided_slice %28 {offsets = [0, 2], sizes = [8, 267], strides = [1, 1]} : vector<8x305xf32> to vector<8x267xf32>
    %32 = vector.extract_strided_slice %28 {offsets = [0, 18], sizes = [8, 267], strides = [1, 1]} : vector<8x305xf32> to vector<8x267xf32>
    %33 = vector.extract_strided_slice %28 {offsets = [0, 19], sizes = [8, 267], strides = [1, 1]} : vector<8x305xf32> to vector<8x267xf32>
    %34 = vector.extract_strided_slice %28 {offsets = [0, 20], sizes = [8, 267], strides = [1, 1]} : vector<8x305xf32> to vector<8x267xf32>
    %35 = vector.extract_strided_slice %28 {offsets = [0, 36], sizes = [8, 267], strides = [1, 1]} : vector<8x305xf32> to vector<8x267xf32>
    %36 = vector.extract_strided_slice %28 {offsets = [0, 37], sizes = [8, 267], strides = [1, 1]} : vector<8x305xf32> to vector<8x267xf32>
    %37 = vector.extract_strided_slice %28 {offsets = [0, 38], sizes = [8, 267], strides = [1, 1]} : vector<8x305xf32> to vector<8x267xf32>
    %38 = tpu.concatenate %29, %30, %31, %32, %33, %34, %35, %36, %37 in 0 : vector<8x267xf32>, vector<8x267xf32>, vector<8x267xf32>, vector<8x267xf32>, vector<8x267xf32>, vector<8x267xf32>, vector<8x267xf32>, vector<8x267xf32>, vector<8x267xf32> -> vector<72x267xf32>
    %c0_12 = arith.constant 0 : index
    %c0_13 = arith.constant 0 : index
    %39 = vector.load %arg6[%c0_12, %c0_13] : memref<16x72xf32, #tpu.memory_space<vmem>>, vector<16x72xf32>
    %cst_14 = arith.constant dense<0.000000e+00> : vector<16x267xf32>
    %40 = tpu.matmul %39, %38, %cst_14 {dimension_numbers = #tpu.dot_dimension_numbers<[1], [0], [0], [1], [0, 0, 1, 1], [], []>} : vector<16x72xf32>, vector<72x267xf32>, vector<16x267xf32> -> vector<16x267xf32>
    %cst_15 = arith.constant dense<0.000000e+00> : vector<16x64xf32>
    %41 = tpu.matmul %40, %1, %cst_15 {dimension_numbers = #tpu.dot_dimension_numbers<[1], [0], [0], [1], [0, 0, 1, 1], [], []>} : vector<16x267xf32>, vector<267x64xf32>, vector<16x64xf32> -> vector<16x64xf32>
    %c0_16 = arith.constant 0 : index
    %c0_17 = arith.constant 0 : index
    %42 = vector.load %arg7[%c0_16, %c0_17] : memref<16x1xf32, #tpu.memory_space<vmem>>, vector<16x1xf32>
    %43 = vector.broadcast %42 : vector<16x1xf32> to vector<16x64xf32>
    %44 = arith.addf %41, %43 : vector<16x64xf32>
    %45 = arith.negf %44 : vector<16x64xf32>
    %46 = math.exp %45 : vector<16x64xf32>
    %cst_18 = arith.constant 1.000000e+00 : f32
    %47 = vector.broadcast %cst_18 : f32 to vector<16x64xf32>
    %48 = arith.addf %47, %46 : vector<16x64xf32>
    %49 = arith.divf %47, %48 : vector<16x64xf32>
    %50 = arith.mulf %44, %49 : vector<16x64xf32>
    %c0_19 = arith.constant 0 : index
    %c0_20 = arith.constant 0 : index
    %51 = vector.load %arg8[%c0_19, %c0_20] : memref<16x16xf32, #tpu.memory_space<vmem>>, vector<16x16xf32>
    %cst_21 = arith.constant dense<0.000000e+00> : vector<16x64xf32>
    %52 = tpu.matmul %51, %50, %cst_21 {dimension_numbers = #tpu.dot_dimension_numbers<[1], [0], [0], [1], [0, 0, 1, 1], [], []>} : vector<16x16xf32>, vector<16x64xf32>, vector<16x64xf32> -> vector<16x64xf32>
    %c0_22 = arith.constant 0 : index
    %c0_23 = arith.constant 0 : index
    %53 = vector.load %arg9[%c0_22, %c0_23] : memref<16x1xf32, #tpu.memory_space<vmem>>, vector<16x1xf32>
    %54 = vector.broadcast %53 : vector<16x1xf32> to vector<16x64xf32>
    %55 = arith.addf %52, %54 : vector<16x64xf32>
    %56 = arith.negf %55 : vector<16x64xf32>
    %57 = math.exp %56 : vector<16x64xf32>
    %cst_24 = arith.constant 1.000000e+00 : f32
    %58 = vector.broadcast %cst_24 : f32 to vector<16x64xf32>
    %59 = arith.addf %58, %57 : vector<16x64xf32>
    %60 = arith.divf %58, %59 : vector<16x64xf32>
    %61 = arith.mulf %55, %60 : vector<16x64xf32>
    %c0_25 = arith.constant 0 : index
    %c0_26 = arith.constant 0 : index
    %62 = vector.load %arg10[%c0_25, %c0_26] : memref<16x16xf32, #tpu.memory_space<vmem>>, vector<16x16xf32>
    %cst_27 = arith.constant dense<0.000000e+00> : vector<16x64xf32>
    %63 = tpu.matmul %62, %61, %cst_27 {dimension_numbers = #tpu.dot_dimension_numbers<[1], [0], [0], [1], [0, 0, 1, 1], [], []>} : vector<16x16xf32>, vector<16x64xf32>, vector<16x64xf32> -> vector<16x64xf32>
    %c0_28 = arith.constant 0 : index
    %c0_29 = arith.constant 0 : index
    %64 = vector.load %arg11[%c0_28, %c0_29] : memref<16x16xf32, #tpu.memory_space<vmem>>, vector<16x16xf32>
    %cst_30 = arith.constant dense<0.000000e+00> : vector<16x64xf32>
    %65 = tpu.matmul %64, %50, %cst_30 {dimension_numbers = #tpu.dot_dimension_numbers<[1], [0], [0], [1], [0, 0, 1, 1], [], []>} : vector<16x16xf32>, vector<16x64xf32>, vector<16x64xf32> -> vector<16x64xf32>
    %66 = arith.addf %63, %65 : vector<16x64xf32>
    %c0_31 = arith.constant 0 : index
    %c0_32 = arith.constant 0 : index
    %67 = vector.load %arg12[%c0_31, %c0_32] : memref<16x1xf32, #tpu.memory_space<vmem>>, vector<16x1xf32>
    %68 = vector.broadcast %67 : vector<16x1xf32> to vector<16x64xf32>
    %69 = arith.addf %66, %68 : vector<16x64xf32>
    %70 = arith.negf %69 : vector<16x64xf32>
    %71 = math.exp %70 : vector<16x64xf32>
    %cst_33 = arith.constant 1.000000e+00 : f32
    %72 = vector.broadcast %cst_33 : f32 to vector<16x64xf32>
    %73 = arith.addf %72, %71 : vector<16x64xf32>
    %74 = arith.divf %72, %73 : vector<16x64xf32>
    %75 = arith.mulf %69, %74 : vector<16x64xf32>
    %c0_34 = arith.constant 0 : index
    %c0_35 = arith.constant 0 : index
    %c0_36 = arith.constant 0 : index
    %76 = vector.load %arg13[%c0_34, %c0_35, %c0_36] : memref<2x16x64xf32, #tpu.memory_space<vmem>>, vector<1x16x64xf32>
    %77 = vector.shape_cast %76 : vector<1x16x64xf32> to vector<16x64xf32>
    %78 = vector.shape_cast %75 : vector<16x64xf32> to vector<1x16x64xf32>
    tpu.vector_store %arg13[%c0_34, %c0_35, %c0_36], %78 {strides = array<i32>} : memref<2x16x64xf32, #tpu.memory_space<vmem>>, vector<1x16x64xf32>,
    %c1 = arith.constant 1 : index
    %c0_37 = arith.constant 0 : index
    %c0_38 = arith.constant 0 : index
    %79 = vector.load %arg1[%c1, %c0_37, %c0_38] : memref<2x8x324xf32, #tpu.memory_space<vmem>>, vector<1x8x324xf32>
    %80 = vector.shape_cast %79 : vector<1x8x324xf32> to vector<8x324xf32>
    %81 = vector.extract_strided_slice %80 {offsets = [0, 0], sizes = [8, 286], strides = [1, 1]} : vector<8x324xf32> to vector<8x286xf32>
    %82 = vector.extract_strided_slice %80 {offsets = [0, 1], sizes = [8, 286], strides = [1, 1]} : vector<8x324xf32> to vector<8x286xf32>
    %83 = vector.extract_strided_slice %80 {offsets = [0, 2], sizes = [8, 286], strides = [1, 1]} : vector<8x324xf32> to vector<8x286xf32>
    %84 = vector.extract_strided_slice %80 {offsets = [0, 18], sizes = [8, 286], strides = [1, 1]} : vector<8x324xf32> to vector<8x286xf32>
    %85 = vector.extract_strided_slice %80 {offsets = [0, 19], sizes = [8, 286], strides = [1, 1]} : vector<8x324xf32> to vector<8x286xf32>
    %86 = vector.extract_strided_slice %80 {offsets = [0, 20], sizes = [8, 286], strides = [1, 1]} : vector<8x324xf32> to vector<8x286xf32>
    %87 = vector.extract_strided_slice %80 {offsets = [0, 36], sizes = [8, 286], strides = [1, 1]} : vector<8x324xf32> to vector<8x286xf32>
    %88 = vector.extract_strided_slice %80 {offsets = [0, 37], sizes = [8, 286], strides = [1, 1]} : vector<8x324xf32> to vector<8x286xf32>
    %89 = vector.extract_strided_slice %80 {offsets = [0, 38], sizes = [8, 286], strides = [1, 1]} : vector<8x324xf32> to vector<8x286xf32>
    %90 = tpu.concatenate %81, %82, %83, %84, %85, %86, %87, %88, %89 in 0 : vector<8x286xf32>, vector<8x286xf32>, vector<8x286xf32>, vector<8x286xf32>, vector<8x286xf32>, vector<8x286xf32>, vector<8x286xf32>, vector<8x286xf32>, vector<8x286xf32> -> vector<72x286xf32>
    %c0_39 = arith.constant 0 : index
    %c0_40 = arith.constant 0 : index
    %91 = vector.load %arg4[%c0_39, %c0_40] : memref<8x72xf32, #tpu.memory_space<vmem>>, vector<8x72xf32>
    %cst_41 = arith.constant dense<0.000000e+00> : vector<8x286xf32>
    %92 = tpu.matmul %91, %90, %cst_41 {dimension_numbers = #tpu.dot_dimension_numbers<[1], [0], [0], [1], [0, 0, 1, 1], [], []>} : vector<8x72xf32>, vector<72x286xf32>, vector<8x286xf32> -> vector<8x286xf32>
    %c0_42 = arith.constant 0 : index
    %c0_43 = arith.constant 0 : index
    %93 = vector.load %arg5[%c0_42, %c0_43] : memref<8x1xf32, #tpu.memory_space<vmem>>, vector<8x1xf32>
    %94 = vector.broadcast %93 : vector<8x1xf32> to vector<8x286xf32>
    %95 = arith.addf %92, %94 : vector<8x286xf32>
    %96 = arith.negf %95 : vector<8x286xf32>
    %97 = math.exp %96 : vector<8x286xf32>
    %cst_44 = arith.constant 1.000000e+00 : f32
    %98 = vector.broadcast %cst_44 : f32 to vector<8x286xf32>
    %99 = arith.addf %98, %97 : vector<8x286xf32>
    %100 = arith.divf %98, %99 : vector<8x286xf32>
    %101 = arith.mulf %95, %100 : vector<8x286xf32>
    %102 = vector.broadcast %0 : vector<1x286xf32> to vector<8x286xf32>
    %103 = arith.mulf %101, %102 : vector<8x286xf32>
    %cst_45 = arith.constant 0.000000e+00 : f32
    %104 = vector.broadcast %cst_45 : f32 to vector<8x19xf32>
    %105 = tpu.concatenate %104, %103 in 1 : vector<8x19xf32>, vector<8x286xf32> -> vector<8x305xf32>
    %106 = vector.extract_strided_slice %105 {offsets = [0, 0], sizes = [8, 267], strides = [1, 1]} : vector<8x305xf32> to vector<8x267xf32>
    %107 = vector.extract_strided_slice %105 {offsets = [0, 1], sizes = [8, 267], strides = [1, 1]} : vector<8x305xf32> to vector<8x267xf32>
    %108 = vector.extract_strided_slice %105 {offsets = [0, 2], sizes = [8, 267], strides = [1, 1]} : vector<8x305xf32> to vector<8x267xf32>
    %109 = vector.extract_strided_slice %105 {offsets = [0, 18], sizes = [8, 267], strides = [1, 1]} : vector<8x305xf32> to vector<8x267xf32>
    %110 = vector.extract_strided_slice %105 {offsets = [0, 19], sizes = [8, 267], strides = [1, 1]} : vector<8x305xf32> to vector<8x267xf32>
    %111 = vector.extract_strided_slice %105 {offsets = [0, 20], sizes = [8, 267], strides = [1, 1]} : vector<8x305xf32> to vector<8x267xf32>
    %112 = vector.extract_strided_slice %105 {offsets = [0, 36], sizes = [8, 267], strides = [1, 1]} : vector<8x305xf32> to vector<8x267xf32>
    %113 = vector.extract_strided_slice %105 {offsets = [0, 37], sizes = [8, 267], strides = [1, 1]} : vector<8x305xf32> to vector<8x267xf32>
    %114 = vector.extract_strided_slice %105 {offsets = [0, 38], sizes = [8, 267], strides = [1, 1]} : vector<8x305xf32> to vector<8x267xf32>
    %115 = tpu.concatenate %106, %107, %108, %109, %110, %111, %112, %113, %114 in 0 : vector<8x267xf32>, vector<8x267xf32>, vector<8x267xf32>, vector<8x267xf32>, vector<8x267xf32>, vector<8x267xf32>, vector<8x267xf32>, vector<8x267xf32>, vector<8x267xf32> -> vector<72x267xf32>
    %c0_46 = arith.constant 0 : index
    %c0_47 = arith.constant 0 : index
    %116 = vector.load %arg6[%c0_46, %c0_47] : memref<16x72xf32, #tpu.memory_space<vmem>>, vector<16x72xf32>
    %cst_48 = arith.constant dense<0.000000e+00> : vector<16x267xf32>
    %117 = tpu.matmul %116, %115, %cst_48 {dimension_numbers = #tpu.dot_dimension_numbers<[1], [0], [0], [1], [0, 0, 1, 1], [], []>} : vector<16x72xf32>, vector<72x267xf32>, vector<16x267xf32> -> vector<16x267xf32>
    %cst_49 = arith.constant dense<0.000000e+00> : vector<16x64xf32>
    %118 = tpu.matmul %117, %1, %cst_49 {dimension_numbers = #tpu.dot_dimension_numbers<[1], [0], [0], [1], [0, 0, 1, 1], [], []>} : vector<16x267xf32>, vector<267x64xf32>, vector<16x64xf32> -> vector<16x64xf32>
    %c0_50 = arith.constant 0 : index
    %c0_51 = arith.constant 0 : index
    %119 = vector.load %arg7[%c0_50, %c0_51] : memref<16x1xf32, #tpu.memory_space<vmem>>, vector<16x1xf32>
    %120 = vector.broadcast %119 : vector<16x1xf32> to vector<16x64xf32>
    %121 = arith.addf %118, %120 : vector<16x64xf32>
    %122 = arith.negf %121 : vector<16x64xf32>
    %123 = math.exp %122 : vector<16x64xf32>
    %cst_52 = arith.constant 1.000000e+00 : f32
    %124 = vector.broadcast %cst_52 : f32 to vector<16x64xf32>
    %125 = arith.addf %124, %123 : vector<16x64xf32>
    %126 = arith.divf %124, %125 : vector<16x64xf32>
    %127 = arith.mulf %121, %126 : vector<16x64xf32>
    %c0_53 = arith.constant 0 : index
    %c0_54 = arith.constant 0 : index
    %128 = vector.load %arg8[%c0_53, %c0_54] : memref<16x16xf32, #tpu.memory_space<vmem>>, vector<16x16xf32>
    %cst_55 = arith.constant dense<0.000000e+00> : vector<16x64xf32>
    %129 = tpu.matmul %128, %127, %cst_55 {dimension_numbers = #tpu.dot_dimension_numbers<[1], [0], [0], [1], [0, 0, 1, 1], [], []>} : vector<16x16xf32>, vector<16x64xf32>, vector<16x64xf32> -> vector<16x64xf32>
    %c0_56 = arith.constant 0 : index
    %c0_57 = arith.constant 0 : index
    %130 = vector.load %arg9[%c0_56, %c0_57] : memref<16x1xf32, #tpu.memory_space<vmem>>, vector<16x1xf32>
    %131 = vector.broadcast %130 : vector<16x1xf32> to vector<16x64xf32>
    %132 = arith.addf %129, %131 : vector<16x64xf32>
    %133 = arith.negf %132 : vector<16x64xf32>
    %134 = math.exp %133 : vector<16x64xf32>
    %cst_58 = arith.constant 1.000000e+00 : f32
    %135 = vector.broadcast %cst_58 : f32 to vector<16x64xf32>
    %136 = arith.addf %135, %134 : vector<16x64xf32>
    %137 = arith.divf %135, %136 : vector<16x64xf32>
    %138 = arith.mulf %132, %137 : vector<16x64xf32>
    %c0_59 = arith.constant 0 : index
    %c0_60 = arith.constant 0 : index
    %139 = vector.load %arg10[%c0_59, %c0_60] : memref<16x16xf32, #tpu.memory_space<vmem>>, vector<16x16xf32>
    %cst_61 = arith.constant dense<0.000000e+00> : vector<16x64xf32>
    %140 = tpu.matmul %139, %138, %cst_61 {dimension_numbers = #tpu.dot_dimension_numbers<[1], [0], [0], [1], [0, 0, 1, 1], [], []>} : vector<16x16xf32>, vector<16x64xf32>, vector<16x64xf32> -> vector<16x64xf32>
    %c0_62 = arith.constant 0 : index
    %c0_63 = arith.constant 0 : index
    %141 = vector.load %arg11[%c0_62, %c0_63] : memref<16x16xf32, #tpu.memory_space<vmem>>, vector<16x16xf32>
    %cst_64 = arith.constant dense<0.000000e+00> : vector<16x64xf32>
    %142 = tpu.matmul %141, %127, %cst_64 {dimension_numbers = #tpu.dot_dimension_numbers<[1], [0], [0], [1], [0, 0, 1, 1], [], []>} : vector<16x16xf32>, vector<16x64xf32>, vector<16x64xf32> -> vector<16x64xf32>
    %143 = arith.addf %140, %142 : vector<16x64xf32>
    %c0_65 = arith.constant 0 : index
    %c0_66 = arith.constant 0 : index
    %144 = vector.load %arg12[%c0_65, %c0_66] : memref<16x1xf32, #tpu.memory_space<vmem>>, vector<16x1xf32>
    %145 = vector.broadcast %144 : vector<16x1xf32> to vector<16x64xf32>
    %146 = arith.addf %143, %145 : vector<16x64xf32>
    %147 = arith.negf %146 : vector<16x64xf32>
    %148 = math.exp %147 : vector<16x64xf32>
    %cst_67 = arith.constant 1.000000e+00 : f32
    %149 = vector.broadcast %cst_67 : f32 to vector<16x64xf32>
    %150 = arith.addf %149, %148 : vector<16x64xf32>
    %151 = arith.divf %149, %150 : vector<16x64xf32>
    %152 = arith.mulf %146, %151 : vector<16x64xf32>
    %c1_68 = arith.constant 1 : index
    %c0_69 = arith.constant 0 : index
    %c0_70 = arith.constant 0 : index
    %153 = vector.load %arg13[%c1_68, %c0_69, %c0_70] : memref<2x16x64xf32, #tpu.memory_space<vmem>>, vector<1x16x64xf32>
    %154 = vector.shape_cast %153 : vector<1x16x64xf32> to vector<16x64xf32>
    %155 = vector.shape_cast %152 : vector<16x64xf32> to vector<1x16x64xf32>
    tpu.vector_store %arg13[%c1_68, %c0_69, %c0_70], %155 {strides = array<i32>} : memref<2x16x64xf32, #tpu.memory_space<vmem>>, vector<1x16x64xf32>,
    return
  }
  func.func @transform_0(%arg0: i32) -> (i32, i32, i32) {
    %c0_i32 = arith.constant 0 : i32
    %c0_i32_0 = arith.constant 0 : i32
    %c0_i32_1 = arith.constant 0 : i32
    %c0_i32_2 = arith.constant 0 : i32
    return %c0_i32, %c0_i32_0, %c0_i32_1 : i32, i32, i32
  }
  func.func @transform_1(%arg0: i32) -> (i32, i32) {
    %c0_i32 = arith.constant 0 : i32
    %c0_i32_0 = arith.constant 0 : i32
    %c0_i32_1 = arith.constant 0 : i32
    return %c0_i32, %c0_i32_0 : i32, i32
  }
  func.func @transform_2(%arg0: i32) -> (i32, i32) {
    %c0_i32 = arith.constant 0 : i32
    %c0_i32_0 = arith.constant 0 : i32
    %c0_i32_1 = arith.constant 0 : i32
    return %c0_i32, %c0_i32_0 : i32, i32
  }
  func.func @transform_3(%arg0: i32) -> (i32, i32) {
    %c0_i32 = arith.constant 0 : i32
    %c0_i32_0 = arith.constant 0 : i32
    %c0_i32_1 = arith.constant 0 : i32
    return %c0_i32, %c0_i32_0 : i32, i32
  }
  func.func @transform_4(%arg0: i32) -> (i32, i32) {
    %c0_i32 = arith.constant 0 : i32
    %c0_i32_0 = arith.constant 0 : i32
    %c0_i32_1 = arith.constant 0 : i32
    return %c0_i32, %c0_i32_0 : i32, i32
  }
  func.func @transform_5(%arg0: i32) -> (i32, i32) {
    %c0_i32 = arith.constant 0 : i32
    %c0_i32_0 = arith.constant 0 : i32
    %c0_i32_1 = arith.constant 0 : i32
    return %c0_i32, %c0_i32_0 : i32, i32
  }
  func.func @transform_6(%arg0: i32) -> (i32, i32) {
    %c0_i32 = arith.constant 0 : i32
    %c0_i32_0 = arith.constant 0 : i32
    %c0_i32_1 = arith.constant 0 : i32
    return %c0_i32, %c0_i32_0 : i32, i32
  }
  func.func @transform_7(%arg0: i32) -> (i32, i32) {
    %c0_i32 = arith.constant 0 : i32
    %c0_i32_0 = arith.constant 0 : i32
    %c0_i32_1 = arith.constant 0 : i32
    return %c0_i32, %c0_i32_0 : i32, i32
  }
  func.func @transform_8(%arg0: i32) -> (i32, i32) {
    %c0_i32 = arith.constant 0 : i32
    %c0_i32_0 = arith.constant 0 : i32
    %c0_i32_1 = arith.constant 0 : i32
    return %c0_i32, %c0_i32_0 : i32, i32
  }
  func.func @transform_9(%arg0: i32) -> (i32, i32) {
    %c0_i32 = arith.constant 0 : i32
    %c0_i32_0 = arith.constant 0 : i32
    %c0_i32_1 = arith.constant 0 : i32
    return %c0_i32, %c0_i32_0 : i32, i32
  }
  func.func @transform_10(%arg0: i32) -> (i32, i32) {
    %c0_i32 = arith.constant 0 : i32
    %c0_i32_0 = arith.constant 0 : i32
    %c0_i32_1 = arith.constant 0 : i32
    return %c0_i32, %c0_i32_0 : i32, i32
  }
  func.func @transform_11(%arg0: i32) -> (i32, i32) {
    %c0_i32 = arith.constant 0 : i32
    %c0_i32_0 = arith.constant 0 : i32
    %c0_i32_1 = arith.constant 0 : i32
    return %c0_i32, %c0_i32_0 : i32, i32
  }
  func.func @transform_12(%arg0: i32) -> (i32, i32, i32) {
    %c0_i32 = arith.constant 0 : i32
    %c0_i32_0 = arith.constant 0 : i32
    %c0_i32_1 = arith.constant 0 : i32
    %c0_i32_2 = arith.constant 0 : i32
    return %c0_i32, %c0_i32_0, %c0_i32_1 : i32, i32, i32
  }
}

</mosaic_0001>

<bundles_post_ra>
// kernel: yaml_model_forward.1
= control target key start
LH: loop header
LB: loop body
LE: loop exit
PB: predicated region body
PF: predicated region fallthrough
CT: control target
= control target key end

     0   :  { %v2957_v2 = vmov 0.0|0.0   ;;  %s2958_s25 = smov 126   ;;  %s2959_s26 = smov 127   ;;  %v3780_v5 = vmov 0.0   ;;  %vm2964_vm0 = vmmov 0   ;;  %v2967_v6 = vmov 0   ;;  %s3760_s0 = inlined_call_operand.vmem [shape: f32[2,8,324], index: 0, kind: input, shape index: {}]   ;;  %s3761_s4 = inlined_call_operand.vmem [shape: f32[8,1], index: 4, kind: input, shape index: {}]   ;;  %s3762_s3 = inlined_call_operand.vmem [shape: f32[8,72], index: 3, kind: input, shape index: {}]   ;;  %s3763_s1 = inlined_call_operand.vmem [shape: f32[1,286], index: 1, kind: input, shape index: {}]   ;;  %s3764_s5 = inlined_call_operand.vmem [shape: f32[16,72], index: 5, kind: input, shape index: {}]   ;;  %s3765_s6 = inlined_call_operand.vmem [shape: f32[16,1], index: 6, kind: input, shape index: {}, may-alias: {6,8,11}]   ;;  %s3766_s8 = inlined_call_operand.vmem [shape: f32[16,1], index: 8, kind: input, shape index: {}, may-alias: {6,8,11}]   ;;  %s3767_s2 = inlined_call_operand.vmem [shape: f32[267,64], index: 2, kind: input, shape index: {}]   ;;  %s3768_s7 = inlined_call_operand.vmem [shape: f32[16,16], index: 7, kind: input, shape index: {}]   ;;  %s3769_s10 = inlined_call_operand.vmem [shape: f32[16,16], index: 10, kind: input, shape index: {}]   ;;  %s3770_s9 = inlined_call_operand.vmem [shape: f32[16,16], index: 9, kind: input, shape index: {}]   ;;  %s3771_s11 = inlined_call_operand.vmem [shape: f32[16,1], index: 11, kind: input, shape index: {}, may-alias: {6,8,11}]   ;;  %s3772_s12 = inlined_call_operand.vmem [shape: f32[2,16,64], index: 12, kind: output, shape index: {}]  }
   0x1   :  { %v77_v0 = vld [vmem:[%s3760_s0 + $0x8] sm:$0xff]  ;;  %v78_v1 = vld [vmem:[%s3760_s0 + $0x10] sm:$0xff]  ;;  %2518 = vmatprep.subr.bf16.mxu1 %v2957_v2  ;;  %v76_v4 = vld [vmem:[%s3760_s0] sm:$0xff]  ;;  %s2960_s29 = smov 110   ;;  %s2961_s30 = smov 108   ;;  %253 = vmatprep.mubr.f32.mxu0 %v3780_v5  ;;  %vm88_vm1 = vcmask 1039360  }
   0x2   :  { %v2747_v3 = vpack.i.bf16 %v78_v1, %v77_v0  ;;  %s2962_s13 = smov 109   ;;  %2380 = vmatprep.mubr.msk.f32.mxu1 %vm2964_vm0, %v3780_v5  ;;  %s2965_s14 = smov 91   ;;  %2777 = vset.pattern.permute.xlu1 %v2967_v6  ;;  %v3068_v7 = vld [vmem:[%s3761_s4] sm:$0xff]  ;;  %vm112_vm2 = vcmask 900096   ;;  %vm100_vm3 = vcmask 1031168   ;;  %vm136_vm4 = vcmask 883712  }
   0x3   :  { %s2966_s15 = smov 92   ;;  %2813 = vset.pattern.permute.xlu0 %v2967_v6  ;;  %s2968_s16 = smov 90   ;;  %vm124_vm5 = vcmask 891904   ;;  %vm160_vm6 = vcmask 744448   ;;  %vm148_vm7 = vcmask 752640   ;;  %vm172_vm8 = vcmask 736256  }
   0x4   :  { %2748 = vrot.lane.b32.xlu1 %v2747_v3, %s2958_s25  ;;  %2743 = vrot.lane.b32.xlu0 %v2747_v3, %s2959_s26  ;;  %v3093_v62 = vld [vmem:[%s3762_s3] sm:$0xff]  ;;  %vm185_vm9 = vcmask 588800   ;;  %s2969_s21 = smov 19   ;;  %vm379_vm10 = vcmask 154624   ;;  %vm2970_vm12 = vmmov 1   ;;  %vm654_vm14 = vcmask 1042432  }
   0x5   :  { %vm2160_vm11 = vmneg %vm379_vm10 }
   0x6   :  { %vm3232_vm13 = vmpackc.low %vm2970_vm12, %vm2160_vm11  ;;  %vm647_vm11 = vcmask 89088  }
   0x7   :  { %vm3458_vm15 = vmpackc.low %vm654_vm14, %vm2970_vm12 }
   0x8   :  { %2753 = vrot.lane.b32.xlu1 %v2747_v3, %s2960_s29  ;;  %82 = vrot.lane.b32.xlu0 %v76_v4, %s2959_s26 }
   0xc   :  { %106 = vrot.lane.b32.xlu1 %v76_v4, %s2960_s29  ;;  %94 = vrot.lane.b32.xlu0 %v76_v4, %s2958_s25 }
  0x10   :  { %2763 = vrot.lane.b32.xlu1 %v2747_v3, %s2961_s30  ;;  %2758 = vrot.lane.b32.xlu0 %v2747_v3, %s2962_s13 }
  0x14   :  { %130 = vrot.lane.b32.xlu1 %v76_v4, %s2961_s30  ;;  %118 = vrot.lane.b32.xlu0 %v76_v4, %s2962_s13 }
  0x18   :  { %2773 = vrot.lane.b32.xlu1 %v2747_v3, %s2965_s14  ;;  %2768 = vrot.lane.b32.xlu0 %v2747_v3, %s2966_s15 }
  0x1c   :  { %154 = vrot.lane.b32.xlu1 %v76_v4, %s2965_s14  ;;  %142 = vrot.lane.b32.xlu0 %v76_v4, %s2966_s15 }
  0x20   :  { %170 = vrot.lane.b32.xlu1 %v78_v1, %s2968_s16  ;;  %168 = vrot.lane.b32.xlu0 %v77_v0, %s2968_s16 }
  0x24   :  { %166 = vrot.lane.b32.xlu0 %v76_v4, %s2968_s16  ;;  %182 = vperm.xlu1 %2777, %v3068_v7  }
  0x76   :  { %v2749_v8 = vpop.permute.xlu1 %2748  ;;  %v2744_v9 = vpop.permute.xlu0 %2743 }
  0x77   :  { %v2746_v10 = vunpack.i.h.bf16 %v2744_v9  ;;  %v2745_v11 = vunpack.i.l.bf16 %v2744_v9  ;;  %v2751_v12 = vunpack.i.h.bf16 %v2749_v8  ;;  %v2750_v13 = vunpack.i.l.bf16 %v2749_v8 }
  0x79   :  { %v2519_v14 = vpack.c.bf16 %v2746_v10, %v78_v1  ;;  %v90_v15 = vsel %vm88_vm1, %v2745_v11, %v2746_v10  ;;  %v102_v24 = vsel %vm100_vm3, %v2750_v13, %v2751_v12 }
  0x7a   :  { %v2754_v16 = vpop.permute.xlu1 %2753  ;;  %v83_v17 = vpop.permute.xlu0 %82  ;;  %v2502_v18 = vpack.c.bf16 %v90_v15, %v77_v0 }
  0x7b   :  { %v2756_v19 = vunpack.i.h.bf16 %v2754_v16  ;;  %v2755_v20 = vunpack.i.l.bf16 %v2754_v16  ;;  %v89_v21 = vsel %vm88_vm1, %v83_v17, %v2745_v11  ;;  %2520 = vmatpush3.bf16.msra.mxu1 %v2519_v14 }
  0x7c   :  { %2503 = vmatprep.subr.bf16.mxu0 %v2502_v18  ;;  %2521 = vmatprep.subr.bf16.mxu1 %v2957_v2  ;;  %v2504_v22 = vpack.c.bf16 %v89_v21, %v76_v4 }
  0x7d   :  { %v2522_v23 = vpack.c.bf16 %v2756_v19, %v2751_v12  ;;  %v114_v25 = vsel %vm112_vm2, %v2755_v20, %v2756_v19 }
  0x7e   :  { %v107_v26 = vpop.permute.xlu1 %106  ;;  %2505 = vmatpush1.bf16.msra.mxu0 %v2504_v22  ;;  %v95_v27 = vpop.permute.xlu0 %94  ;;  %v2506_v28 = vpack.c.bf16 %v114_v25, %v102_v24  ;;  %v352_v24 = vlaneseq }
  0x7f   :  { %v113_v29 = vsel %vm112_vm2, %v107_v26, %v2755_v20  ;;  %v101_v30 = vsel %vm100_vm3, %v95_v27, %v2750_v13  ;;  %2523 = vmatpush3.bf16.msra.mxu1 %v2522_v23 }
  0x80   :  { %v2508_v31 = vpack.c.bf16 %v113_v29, %v101_v30  ;;  %2507 = vmatprep.subr.bf16.mxu0 %v2506_v28  ;;  %2524 = vmatprep.subr.bf16.mxu1 %v2957_v2  ;;  %v353_v25 = vshrl.u32 %v352_v24, 7  ;;  %v41_v28 = vld [vmem:[%s3763_s1] sm:$0x7] }
  0x82   :  { %v2764_v32 = vpop.permute.xlu1 %2763  ;;  %2509 = vmatpush1.bf16.msra.mxu0 %v2508_v31  ;;  %v2759_v33 = vpop.permute.xlu0 %2758  ;;  %v354_v26 = vsub.s32 0, %v353_v25  ;;  %v358_v27 = vsub.s32 1, %v353_v25  ;;  %v362_v31 = vsub.s32 2, %v353_v25 }
  0x83   :  { %v2766_v34 = vunpack.i.h.bf16 %v2764_v32  ;;  %v2765_v35 = vunpack.i.l.bf16 %v2764_v32  ;;  %v2761_v36 = vunpack.i.h.bf16 %v2759_v33  ;;  %v2760_v37 = vunpack.i.l.bf16 %v2759_v33 }
  0x84   :  { %v3105_v30 = vrot.slane %v41_v28, %v354_v26  ;;  %v3107_v33 = vrot.slane %v41_v28, %v358_v27 }
  0x85   :  { %v2525_v38 = vpack.c.bf16 %v2766_v34, %v2761_v36  ;;  %v126_v39 = vsel %vm124_vm5, %v2760_v37, %v2761_v36  ;;  %v138_v40 = vsel %vm136_vm4, %v2765_v35, %v2766_v34 }
  0x86   :  { %v131_v41 = vpop.permute.xlu1 %130  ;;  %v119_v42 = vpop.permute.xlu0 %118  ;;  %v2510_v43 = vpack.c.bf16 %v138_v40, %v126_v39  ;;  %v3110_v39 = vrot.slane %v41_v28, %v362_v31 }
  0x87   :  { %v137_v44 = vsel %vm136_vm4, %v131_v41, %v2765_v35  ;;  %v125_v45 = vsel %vm124_vm5, %v119_v42, %v2760_v37  ;;  %2526 = vmatpush3.bf16.msra.mxu1 %v2525_v38 }
  0x88   :  { %v2512_v46 = vpack.c.bf16 %v137_v44, %v125_v45  ;;  %2511 = vmatprep.subr.bf16.mxu0 %v2510_v43  ;;  %2527 = vmatprep.subr.bf16.mxu1 %v2957_v2 }
  0x8a   :  { %v2774_v47 = vpop.permute.xlu1 %2773  ;;  %v2769_v48 = vpop.permute.xlu0 %2768  ;;  %2513 = vmatpush1.bf16.msra.mxu0 %v2512_v46 }
  0x8b   :  { %v2776_v49 = vunpack.i.h.bf16 %v2774_v47  ;;  %v2775_v50 = vunpack.i.l.bf16 %v2774_v47  ;;  %v2771_v51 = vunpack.i.h.bf16 %v2769_v48  ;;  %v2770_v52 = vunpack.i.l.bf16 %v2769_v48 }
  0x8d   :  { %v2528_v53 = vpack.c.bf16 %v2776_v49, %v2771_v51  ;;  %v150_v54 = vsel %vm148_vm7, %v2770_v52, %v2771_v51  ;;  %v162_v55 = vsel %vm160_vm6, %v2775_v50, %v2776_v49  ;;  %v3145_v49 = vld [vmem:[%s3764_s5] sm:$0xff] }
  0x8e   :  { %v155_v56 = vpop.permute.xlu1 %154  ;;  %v143_v57 = vpop.permute.xlu0 %142  ;;  %v2514_v58 = vpack.c.bf16 %v162_v55, %v150_v54  ;;  %v3165_v51 = vld [vmem:[%s3766_s8] sm:$0xff]  ;;  %v3182_v54 = vld [vmem:[%s3760_s0 + $0x28] sm:$0xff] }
  0x8f   :  { %v161_v59 = vsel %vm160_vm6, %v155_v56, %v2775_v50  ;;  %v149_v60 = vsel %vm148_vm7, %v143_v57, %v2770_v52  ;;  %2529 = vmatpush3.bf16.msra.mxu1 %v2528_v53  ;;  %v3159_v50 = vld [vmem:[%s3765_s6 + $0x8] sm:$0xff]  ;;  %v3170_v52 = vld [vmem:[%s3765_s6] sm:$0xff]  ;;  %v3196_v57 = vld [vmem:[%s3760_s0 + $0x18] sm:$0xff] }
  0x90   :  { %v2516_v61 = vpack.c.bf16 %v161_v59, %v149_v60  ;;  %2515 = vmatprep.subr.bf16.mxu0 %v2514_v58  ;;  %2378 = vmatprep.subr.mxu1 %v3780_v5  ;;  %v3177_v53 = vld [vmem:[%s3760_s0 + $0x20] sm:$0xff]  ;;  %v3187_v55 = vld [vmem:[%s3766_s8 + $0x8] sm:$0xff] }
  0x91   :  { %v2814_v56 = vpack.i.bf16 %v3182_v54, %v3177_v53 }
  0x92   :  { %v171_v63 = vpop.permute.xlu1 %170  ;;  %v169_v0 = vpop.permute.xlu0 %168  ;;  %2517 = vmatpush1.bf16.msra.mxu0 %v2516_v61 }
  0x93   :  { %2379 = vmatpush3.msra.mxu1 %v171_v63  ;;  %v174_v1 = vsel %vm172_vm8, %v169_v0, %v171_v63 }
  0x94   :  { %205 = vmatprep.subr.mxu0 %v174_v1  ;;  %2381 = vmatmul.mubr.msk.f32.vlgmr.msra.gmra.mrb[0].mxu1 %vm185_vm9, %v3093_v62 }
  0x95   :  { %2401 = vmatprep.mubr.msk.f32.mxu1 %vm185_vm9, %v3145_v49 }
  0x96   :  { %v167_v3 = vpop.permute.xlu0 %166 }
  0x97   :  { %v173_v4 = vsel %vm172_vm8, %v167_v3, %v169_v0 }
  0x98   :  { %206 = vmatpush1.msra.mxu0 %v173_v4 }
  0x99   :  { %2155 = vmatmul.mubr.msk.f32.vlgmr.msra.gmra.mrb[0].mxu0 %vm185_vm9, %v3093_v62 }
  0x9a   :  { %547 = vmatprep.mubr.f32.mxu0 %v3780_v5 }
  0xa3   :  { %v183_v6 = vpop.permute.xlu1 %182 }
 0x167   :  { %v326_v8 = vpop.f32.mrb[0].mxu1 }
 0x168   :  { %v327_v9 = vadd.f32 %v326_v8, %v183_v6  ;;  %v2382_v10 = vpop.f32.mrb[1].mxu1 }
 0x16a   :  { %v2159_v11 = vmul.f32 -1.442695, %v327_v9 }
 0x16c   :  { %2884 = vpow2.f32 %v2159_v11  ;;  %v255_v12 = vpop.f32.mrb[0].mxu0 }
 0x16d   :  { %v256_v13 = vadd.f32 %v255_v12, %v183_v6  ;;  %v257_v14 = vpop.f32.mrb[1].mxu0 }
 0x16e   :  { %v258_v15 = vadd.f32 %v257_v14, %v183_v6 }
 0x16f   :  { %v2157_v16 = vmul.f32 -1.442695, %v256_v13 }
 0x170   :  { %v2158_v17 = vmul.f32 -1.442695, %v258_v15 }
 0x171   :  { %2886 = vpow2.f32 %v2157_v16 }
 0x172   :  { %2888 = vpow2.f32 %v2158_v17 }
 0x176   :  { %v2885_v18 = vpop.eup %2884 }
 0x177   :  { %v341_v19 = vadd.f32 1.0, %v2885_v18 }
 0x179   :  { %2890 = vrcp.f32 %v341_v19 }
 0x17b   :  { %v2887_v20 = vpop.eup %2886 }
 0x17c   :  { %v2889_v21 = vpop.eup %2888  ;;  %v339_v22 = vadd.f32 1.0, %v2887_v20 }
 0x17d   :  { %v340_v23 = vadd.f32 1.0, %v2889_v21 }
 0x17e   :  { %2892 = vrcp.f32 %v339_v22 }
 0x17f   :  { %2894 = vrcp.f32 %v340_v23 }
 0x183   :  { %v2891_v29 = vpop.eup %2890 }
 0x184   :  { %v350_v37 = vmul.f32 %v2891_v29, %v327_v9 }
 0x186   :  { %v369_v41 = vmul.f32 %v3110_v39, %v350_v37 }
 0x188   :  { %v2893_v32 = vpop.eup %2892 }
 0x189   :  { %v2895_v34 = vpop.eup %2894  ;;  %v348_v35 = vmul.f32 %v2893_v32, %v256_v13 }
 0x18a   :  { %v349_v36 = vmul.f32 %v2895_v34, %v258_v15 }
 0x18b   :  { %v367_v38 = vmul.f32 %v3105_v30, %v348_v35 }
 0x18c   :  { %v368_v40 = vmul.f32 %v3107_v33, %v349_v36 }
 0x18d   :  { %373 = vrot.lane.b32.xlu0 %v367_v38, %s2969_s21 }
 0x18e   :  { %375 = vrot.lane.b32.xlu1 %v368_v40, %s2969_s21 }
 0x191   :  { %377 = vrot.lane.b32.xlu0 %v369_v41, %s2969_s21 }
 0x1ff   :  { %v3117_v42 = vpop.permute.xlu0 %373 }
 0x200   :  { %v385_v43 = vsel %vm379_vm10, 0.0, %v3117_v42  ;;  %v376_v45 = vpop.permute.xlu1 %375 }
 0x201   :  { %398 = vrot.lane.b32.xlu1 %v385_v43, %s2958_s25  ;;  %387 = vrot.lane.b32.xlu0 %v385_v43, %s2959_s26  ;;  %v3132_v47 = vsel %vm379_vm10, %v3117_v42, %v376_v45 }
 0x203   :  { %v378_v44 = vpop.permute.xlu0 %377 }
 0x204   :  { %v3126_v46 = vsel %vm379_vm10, %v376_v45, %v378_v44 }
 0x205   :  { %420 = vrot.lane.b32.xlu1 %v385_v43, %s2962_s13  ;;  %409 = vrot.lane.b32.xlu0 %v385_v43, %s2960_s29  ;;  %v2788_v48 = vpack.i.bf16 %v3126_v46, %v3132_v47 }
 0x209   :  { %442 = vrot.lane.b32.xlu1 %v385_v43, %s2966_s15  ;;  %431 = vrot.lane.b32.xlu0 %v385_v43, %s2961_s30 }
 0x20d   :  { %2789 = vrot.lane.b32.xlu0 %v2788_v48, %s2960_s29  ;;  %2779 = vrot.lane.b32.xlu1 %v2788_v48, %s2959_s26 }
 0x211   :  { %2799 = vrot.lane.b32.xlu0 %v2788_v48, %s2961_s30  ;;  %2784 = vrot.lane.b32.xlu1 %v2788_v48, %s2958_s25 }
 0x215   :  { %2809 = vrot.lane.b32.xlu0 %v2788_v48, %s2965_s14  ;;  %2794 = vrot.lane.b32.xlu1 %v2788_v48, %s2962_s13 }
 0x219   :  { %453 = vrot.lane.b32.xlu0 %v385_v43, %s2965_s14  ;;  %2804 = vrot.lane.b32.xlu1 %v2788_v48, %s2966_s15 }
 0x21d   :  { %468 = vrot.lane.b32.xlu0 %v3126_v46, %s2968_s16  ;;  %466 = vrot.lane.b32.xlu1 %v3132_v47, %s2968_s16 }
 0x221   :  { %464 = vrot.lane.b32.xlu1 %v385_v43, %s2968_s16  ;;  %639 = vperm.xlu0 %2813, %v3170_v52  }
 0x225   :  { %644 = vperm.xlu1 %2777, %v3159_v50   ;;  %833 = vperm.xlu0 %2813, %v3187_v55  }
 0x229   :  { %828 = vperm.xlu1 %2777, %v3165_v51   ;;  %1136 = vrot.lane.b32.xlu0 %v3196_v57, %s2959_s26 }
 0x22d   :  { %2815 = vrot.lane.b32.xlu1 %v2814_v56, %s2959_s26  ;;  %2825 = vrot.lane.b32.xlu0 %v2814_v56, %s2960_s29 }
 0x231   :  { %2820 = vrot.lane.b32.xlu1 %v2814_v56, %s2958_s25  ;;  %1158 = vrot.lane.b32.xlu0 %v3196_v57, %s2960_s29 }
 0x235   :  { %1147 = vrot.lane.b32.xlu1 %v3196_v57, %s2958_s25  ;;  %2835 = vrot.lane.b32.xlu0 %v2814_v56, %s2961_s30 }
 0x239   :  { %2830 = vrot.lane.b32.xlu1 %v2814_v56, %s2962_s13  ;;  %1180 = vrot.lane.b32.xlu0 %v3196_v57, %s2961_s30 }
 0x23d   :  { %1169 = vrot.lane.b32.xlu1 %v3196_v57, %s2962_s13  ;;  %2845 = vrot.lane.b32.xlu0 %v2814_v56, %s2965_s14 }
 0x241   :  { %2840 = vrot.lane.b32.xlu1 %v2814_v56, %s2966_s15  ;;  %1202 = vrot.lane.b32.xlu0 %v3196_v57, %s2965_s14 }
 0x245   :  { %1191 = vrot.lane.b32.xlu1 %v3196_v57, %s2966_s15  ;;  %1217 = vrot.lane.b32.xlu0 %v3182_v54, %s2968_s16 }
 0x249   :  { %1215 = vrot.lane.b32.xlu1 %v3177_v53, %s2968_s16  ;;  %1228 = vperm.xlu0 %2813, %v3068_v7  }
 0x24d   :  { %1213 = vrot.lane.b32.xlu1 %v3196_v57, %s2968_s16 }
 0x273   :  { %v399_v58 = vpop.permute.xlu1 %398  ;;  %v388_v59 = vpop.permute.xlu0 %387 }
 0x277   :  { %v421_v60 = vpop.permute.xlu1 %420  ;;  %v410_v61 = vpop.permute.xlu0 %409 }
 0x27b   :  { %v443_v63 = vpop.permute.xlu1 %442  ;;  %v432_v0 = vpop.permute.xlu0 %431 }
 0x27f   :  { %v2780_v1 = vpop.permute.xlu1 %2779  ;;  %v2790_v3 = vpop.permute.xlu0 %2789 }
 0x280   :  { %v2782_v4 = vunpack.i.h.bf16 %v2780_v1  ;;  %v2781_v6 = vunpack.i.l.bf16 %v2780_v1  ;;  %v2792_v8 = vunpack.i.h.bf16 %v2790_v3  ;;  %v2791_v9 = vunpack.i.l.bf16 %v2790_v3 }
 0x282   :  { %v2547_v10 = vpack.c.bf16 %v2782_v4, %v3126_v46  ;;  %v393_v11 = vsel %vm88_vm1, %v388_v59, %v2781_v6  ;;  %v394_v7 = vsel %vm88_vm1, %v2781_v6, %v2782_v4  ;;  %v415_v19 = vsel %vm112_vm2, %v410_v61, %v2791_v9  ;;  %v58_v4 = vld [vmem:[%s3767_s2 + $0x80] sm:$0xff]  ;;  %v59_v6 = vld [vmem:[%s3767_s2 + $0x88] sm:$0xff] }
 0x283   :  { %v2532_v12 = vpack.c.bf16 %v393_v11, %v3117_v42  ;;  %v2785_v13 = vpop.permute.xlu1 %2784  ;;  %v2800_v14 = vpop.permute.xlu0 %2799  ;;  %v2530_v15 = vpack.c.bf16 %v394_v7, %v3132_v47  ;;  %v416_v21 = vsel %vm112_vm2, %v2791_v9, %v2792_v8  ;;  %v61_v11 = vld [vmem:[%s3767_s2 + $0x98] sm:$0xff] }
 0x284   :  { %v2787_v17 = vunpack.i.h.bf16 %v2785_v13  ;;  %v2786_v18 = vunpack.i.l.bf16 %v2785_v13  ;;  %2548 = vmatprep.subr.bf16.mxu1 %v2547_v10  ;;  %v2801_v20 = vunpack.i.l.bf16 %v2800_v14  ;;  %v2802_v24 = vunpack.i.h.bf16 %v2800_v14 }
 0x285   :  { %2531 = vmatprep.subr.bf16.mxu0 %v2530_v15  ;;  %2550 = vmatpush3.bf16.msra.mxu1 %v2547_v10  ;;  %v60_v10 = vld [vmem:[%s3767_s2 + $0x90] sm:$0xff]  ;;  %v3274_v13 = vpack.c.bf16 %v59_v6, %v58_v4  ;;  %v73_v4 = vld [vmem:[%s3767_s2 + $0xf8] sm:$0xff] }
 0x286   :  { %v404_v22 = vsel %vm100_vm3, %v399_v58, %v2786_v18  ;;  %v2551_v23 = vpack.c.bf16 %v2792_v8, %v2787_v17  ;;  %2534 = vmatpush1.bf16.msk.msra.mxu0 %vm3232_vm13, %v2532_v12  ;;  %v405_v25 = vsel %vm100_vm3, %v2786_v18, %v2787_v17  ;;  %v437_v34 = vsel %vm136_vm4, %v432_v0, %v2801_v20  ;;  %v43_v8 = vld [vmem:[%s3767_s2 + $0x8] sm:$0xff]  ;;  %v44_v18 = vld [vmem:[%s3767_s2 + $0x10] sm:$0xff] }
 0x287   :  { %v2537_v26 = vpack.c.bf16 %v415_v19, %v404_v22  ;;  %v2795_v27 = vpop.permute.xlu1 %2794  ;;  %v2810_v28 = vpop.permute.xlu0 %2809  ;;  %v2535_v29 = vpack.c.bf16 %v416_v21, %v405_v25  ;;  %v438_v41 = vsel %vm136_vm4, %v2801_v20, %v2802_v24  ;;  %v3272_v12 = vld [vmem:[%s3764_s5 + $0x8] sm:$0xff]  ;;  %v3279_v17 = vpack.c.bf16 %v61_v11, %v60_v10  ;;  %v45_v19 = vld [vmem:[%s3767_s2 + $0x18] sm:$0xff]  ;;  %v62_v20 = vld [vmem:[%s3767_s2 + $0xa0] sm:$0xff] }
 0x288   :  { %v2797_v31 = vunpack.i.h.bf16 %v2795_v27  ;;  %v2796_v32 = vunpack.i.l.bf16 %v2795_v27  ;;  %2552 = vmatprep.subr.bf16.mxu1 %v2551_v23  ;;  %v2812_v35 = vunpack.i.h.bf16 %v2810_v28  ;;  %v2811_v36 = vunpack.i.l.bf16 %v2810_v28  ;;  %v63_v21 = vld [vmem:[%s3767_s2 + $0xa8] sm:$0xff]  ;;  %v65_v27 = vld [vmem:[%s3767_s2 + $0xb8] sm:$0xff]  ;;  %v56_v11 = vld [vmem:[%s3767_s2 + $0x70] sm:$0xff] }
 0x289   :  { %2536 = vmatprep.subr.bf16.mxu0 %v2535_v29  ;;  %2554 = vmatpush3.bf16.msra.mxu1 %v2551_v23  ;;  %v3300_v22 = vpack.c.bf16 %v45_v19, %v44_v18  ;;  %v3303_v23 = vpack.c.bf16 %v63_v21, %v62_v20  ;;  %v47_v25 = vld [vmem:[%s3767_s2 + $0x28] sm:$0xff] }
 0x28a   :  { %v426_v37 = vsel %vm124_vm5, %v421_v60, %v2796_v32  ;;  %v2555_v38 = vpack.c.bf16 %v2802_v24, %v2797_v31  ;;  %2538 = vmatpush1.bf16.msra.mxu0 %v2537_v26  ;;  %v427_v40 = vsel %vm124_vm5, %v2796_v32, %v2797_v31  ;;  %v460_v48 = vsel %vm160_vm6, %v2811_v36, %v2812_v35  ;;  %v46_v24 = vld [vmem:[%s3767_s2 + $0x20] sm:$0xff]  ;;  %v64_v26 = vld [vmem:[%s3767_s2 + $0xb0] sm:$0xff]  ;;  %v49_v32 = vld [vmem:[%s3767_s2 + $0x38] sm:$0xff] }
 0x28b   :  { %v2541_v42 = vpack.c.bf16 %v437_v34, %v426_v37  ;;  %v2805_v43 = vpop.permute.xlu1 %2804  ;;  %v454_v44 = vpop.permute.xlu0 %453  ;;  %v2539_v45 = vpack.c.bf16 %v438_v41, %v427_v40  ;;  %v3320_v28 = vpack.c.bf16 %v47_v25, %v46_v24  ;;  %v3323_v29 = vpack.c.bf16 %v65_v27, %v64_v26  ;;  %v48_v31 = vld [vmem:[%s3767_s2 + $0x30] sm:$0xff]  ;;  %v66_v34 = vld [vmem:[%s3767_s2 + $0xc0] sm:$0xff]  ;;  %v51_v40 = vld [vmem:[%s3767_s2 + $0x48] sm:$0xff] }
 0x28c   :  { %v2807_v46 = vunpack.i.h.bf16 %v2805_v43  ;;  %v2806_v47 = vunpack.i.l.bf16 %v2805_v43  ;;  %2556 = vmatprep.subr.bf16.mxu1 %v2555_v38  ;;  %v459_v59 = vsel %vm160_vm6, %v454_v44, %v2811_v36  ;;  %v3338_v36 = vpack.c.bf16 %v49_v32, %v48_v31  ;;  %v68_v41 = vld [vmem:[%s3767_s2 + $0xd0] sm:$0xff] }
 0x28d   :  { %2540 = vmatprep.subr.bf16.mxu0 %v2539_v45  ;;  %2558 = vmatpush3.bf16.msra.mxu1 %v2555_v38  ;;  %v50_v38 = vld [vmem:[%s3767_s2 + $0x40] sm:$0xff] }
 0x28e   :  { %v2559_v56 = vpack.c.bf16 %v2812_v35, %v2807_v46  ;;  %v448_v58 = vsel %vm148_vm7, %v443_v63, %v2806_v47  ;;  %2542 = vmatpush1.bf16.msra.mxu0 %v2541_v42  ;;  %v449_v60 = vsel %vm148_vm7, %v2806_v47, %v2807_v46  ;;  %v42_v63 = vld [vmem:[%s3767_s2] sm:$0xff]  ;;  %v67_v35 = vld [vmem:[%s3767_s2 + $0xc8] sm:$0xff]  ;;  %v69_v42 = vld [vmem:[%s3767_s2 + $0xd8] sm:$0xff]  ;;  %v3358_v44 = vpack.c.bf16 %v51_v40, %v50_v38 }
 0x28f   :  { %v2545_v61 = vpack.c.bf16 %v459_v59, %v448_v58  ;;  %v467_v0 = vpop.permute.xlu1 %466  ;;  %v469_v1 = vpop.permute.xlu0 %468  ;;  %v2543_v3 = vpack.c.bf16 %v460_v48, %v449_v60  ;;  %v3277_v15 = vpack.c.bf16 %v43_v8, %v42_v63  ;;  %v3341_v37 = vpack.c.bf16 %v67_v35, %v66_v34  ;;  %v52_v46 = vld [vmem:[%s3767_s2 + $0x50] sm:$0xff]  ;;  %v53_v47 = vld [vmem:[%s3767_s2 + $0x58] sm:$0xff]  ;;  %v70_v48 = vld [vmem:[%s3767_s2 + $0xe0] sm:$0xff] }
 0x290   :  { %2560 = vmatprep.subr.bf16.mxu1 %v2559_v56  ;;  %v471_v9 = vsel %vm172_vm8, %v467_v0, %v469_v1  ;;  %v3361_v45 = vpack.c.bf16 %v69_v42, %v68_v41  ;;  %v3380_v60 = vpack.c.bf16 %v53_v47, %v52_v46  ;;  %v74_v40 = vld [vmem:[%s3767_s2 + $0x100] sm:$0xff]  ;;  %v75_v41 = vld [vmem:[%s3767_s2 + $0x108] sm:$0x7] }
 0x291   :  { %2544 = vmatprep.subr.bf16.mxu0 %v2543_v3  ;;  %2562 = vmatpush3.bf16.msra.mxu1 %v2559_v56  ;;  %v71_v56 = vld [vmem:[%s3767_s2 + $0xe8] sm:$0xff]  ;;  %v72_v3 = vld [vmem:[%s3767_s2 + $0xf0] sm:$0xff]  ;;  %v3455_v47 = vpack.c.bf16 %v75_v41, %v74_v40 }
 0x292   :  { %2546 = vmatpush1.bf16.msra.mxu0 %v2545_v61  ;;  %2399 = vmatprep.subr.mxu1 %v469_v1  ;;  %v3383_v61 = vpack.c.bf16 %v71_v56, %v70_v48  ;;  %v3406_v10 = vpack.c.bf16 %v73_v4, %v72_v3 }
 0x293   :  { %v465_v7 = vpop.permute.xlu1 %464  ;;  %499 = vmatprep.subr.mxu0 %v471_v9 }
 0x294   :  { %v470_v14 = vsel %vm172_vm8, %v465_v7, %v467_v0  ;;  %v54_v0 = vld [vmem:[%s3767_s2 + $0x60] sm:$0xff]  ;;  %3795 = vst [vmem:[#allocation3_spill] sm:$0xff] %v3406_v10  ;;  %v57_v7 = vld [vmem:[%s3767_s2 + $0x78] sm:$0xff] }
 0x295   :  { %2400 = vmatpush3.msra.mxu1 %v469_v1  ;;  %v55_v1 = vld [vmem:[%s3767_s2 + $0x68] sm:$0xff]  ;;  %v3417_v19 = vpack.c.bf16 %v57_v7, %v56_v11 }
 0x296   :  { %500 = vmatpush1.msra.mxu0 %v470_v14  ;;  %2402 = vmatmul.mubr.msk.f32.vlgmr.msra.gmra.mrb[2].mxu1 %vm185_vm9, %v3272_v12  ;;  %v3402_v8 = vpack.c.bf16 %v55_v1, %v54_v0 }
 0x297   :  { %2162 = vmatmul.mubr.msk.f32.vlgmr.msra.gmra.mrb[2].mxu0 %vm185_vm9, %v3145_v49  ;;  %2564 = vmatprep.subr.bf16.mxu0 %v3274_v13  ;;  %3796 = vst [vmem:[#allocation4_spill] sm:$0xff] %v3417_v19 }
 0x298   :  { %553 = vmatprep.mubr.f32.mxu0 %v3780_v5  ;;  %2566 = vmatpush3.bf16.msra.mxu0 %v3277_v15  ;;  %3794 = vst [vmem:[#allocation2_spill] sm:$0xff] %v3402_v8 }
 0x299   :  { %2568 = vmatprep.subr.bf16.mxu0 %v3279_v17  ;;  %2597 = vmatprep.subr.msk.bf16.mxu1 %vm3458_vm15, %v3455_v47 }
 0x29a   :  { %2600 = vmatpush3.bf16.msk.msra.mxu1 %vm3458_vm15, %v3455_v47 }
 0x29b   :  { %2163 = vmatmul.mubr.msk.f32.gmra.mrb[4].mxu0 %vm185_vm9, %v3272_v12 }
 0x29c   :  { %2570 = vmatpush3.bf16.msra.mxu0 %v3300_v22 }
 0x29d   :  { %2572 = vmatprep.subr.bf16.mxu0 %v3303_v23 }
 0x2a0   :  { %2574 = vmatpush3.bf16.msra.mxu0 %v3320_v28  ;;  %v3377_v59 = vpop.permute.xlu0 %639 }
 0x2a1   :  { %2576 = vmatprep.subr.bf16.mxu0 %v3323_v29 }
 0x2a4   :  { %v3355_v43 = vpop.permute.xlu1 %644  ;;  %2578 = vmatpush3.bf16.msra.mxu0 %v3338_v36  ;;  %v3397_v6 = vpop.permute.xlu0 %833 }
 0x2a5   :  { %2580 = vmatprep.subr.bf16.mxu0 %v3341_v37 }
 0x2a8   :  { %v3375_v58 = vpop.permute.xlu1 %828  ;;  %2582 = vmatpush3.bf16.msra.mxu0 %v3358_v44  ;;  %v1137_v14 = vpop.permute.xlu0 %1136 }
 0x2a9   :  { %2584 = vmatprep.subr.bf16.mxu0 %v3361_v45 }
 0x2ac   :  { %v3399_v63 = vpop.permute.xlu1 %2815  ;;  %2586 = vmatpush3.bf16.msra.mxu0 %v3380_v60  ;;  %v3426_v24 = vpop.permute.xlu0 %2825 }
 0x2ad   :  { %v3773_v9 = vunpack.i.l.bf16 %v3399_v63  ;;  %2588 = vmatprep.subr.bf16.mxu0 %v3383_v61  ;;  %v3784_v26 = vunpack.i.l.bf16 %v3426_v24 }
 0x2af   :  { %v3422_v20 = vsel %vm88_vm1, %v1137_v14, %v3773_v9 }
 0x2b0   :  { %v3414_v18 = vpop.permute.xlu1 %2820  ;;  %2590 = vmatpush3.bf16.msra.mxu0 %v3402_v8  ;;  %v1159_v31 = vpop.permute.xlu0 %1158 }
 0x2b1   :  { %v3786_v21 = vunpack.i.l.bf16 %v3414_v18  ;;  %2592 = vmatprep.subr.bf16.mxu0 %v3406_v10  ;;  %v3439_v32 = vsel %vm112_vm2, %v1159_v31, %v3784_v26  ;;  %v3775_v31 = vunpack.i.h.bf16 %v3399_v63 }
 0x2b3   :  { %v2630_v41 = vpack.c.bf16 %v3775_v31, %v3182_v54 }
 0x2b4   :  { %v1148_v25 = vpop.permute.xlu1 %1147  ;;  %2594 = vmatpush3.bf16.msra.mxu0 %v3417_v19  ;;  %v3445_v38 = vpop.permute.xlu0 %2835 }
 0x2b5   :  { %v3433_v27 = vsel %vm100_vm3, %v1148_v25, %v3786_v21  ;;  %2629 = vmatprep.subr.bf16.mxu0 %v2957_v2  ;;  %v3776_v46 = vunpack.i.l.bf16 %v3445_v38 }
 0x2b8   :  { %v3443_v35 = vpop.permute.xlu1 %2830  ;;  %v1181_v0 = vpop.permute.xlu0 %1180 }
 0x2b9   :  { %v3777_v42 = vunpack.i.l.bf16 %v3443_v35  ;;  %v3476_v3 = vsel %vm136_vm4, %v1181_v0, %v3776_v46  ;;  %v3785_v0 = vunpack.i.h.bf16 %v3426_v24  ;;  %v3783_v54 = vunpack.i.h.bf16 %v3443_v35 }
 0x2bc   :  { %v1170_v56 = vpop.permute.xlu1 %1169  ;;  %v3480_v11 = vpop.permute.xlu0 %2845 }
 0x2bd   :  { %v3471_v1 = vsel %vm124_vm5, %v1170_v56, %v3777_v42  ;;  %v3774_v7 = vunpack.i.l.bf16 %v3480_v11  ;;  %v3787_v56 = vunpack.i.h.bf16 %v3414_v18 }
 0x2c0   :  { %v1203_v14 = vpop.permute.xlu0 %1202  ;;  %v3503_v42 = vpop.permute.xlu1 %2840 }
 0x2c1   :  { %v3486_v25 = vsel %vm160_vm6, %v1203_v14, %v3774_v7  ;;  %v2633_v14 = vpack.c.bf16 %v3785_v0, %v3787_v56  ;;  %v3782_v7 = vunpack.i.h.bf16 %v3445_v38 }
 0x369   :  { %v2403_v40 = vpop.f32.mrb[2].mxu1 }
 0x36a   :  { %v549_v4 = vpop.f32.mrb[2].mxu0  ;;  %v626_v34 = vpop.f32.mrb[3].mxu1 }
 0x36b   :  { %v551_v9 = vpop.f32.mrb[3].mxu0  ;;  %2408 = vmatprep.mubr.msk.f32.mxu1 %vm647_vm11, %v626_v34  ;;  %v3779_v34 = vunpack.i.h.bf16 %v3503_v42 }
 0x36c   :  { %722 = vmatprep.mubr.f32.mxu0 %v551_v9  ;;  %2409 = vmatmul.mubr.msk.f32.vlgmr.msra.gmra.mrb[4].mxu1 %vm647_vm11, %v2403_v40  ;;  %v2636_v9 = vpack.c.bf16 %v3782_v7, %v3783_v54  ;;  %v3530_v40 = vld [vmem:[%s3768_s7] sm:$0xff] }
 0x36d   :  { %723 = vmatmul.mubr.f32.vlgmr.msra.gmra.mrb[6].mxu0 %v549_v4  ;;  %v3778_v4 = vunpack.i.h.bf16 %v3480_v11  ;;  %3799 = vst [vmem:[#allocation5_spill] sm:$0xff] %v3530_v40 }
 0x36e   :  { %2631 = vmatpush3.bf16.msra.mxu0 %v2630_v41  ;;  %v555_v31 = vpop.f32.mrb[4].mxu0 }
 0x36f   :  { %v557_v46 = vpop.f32.mrb[5].mxu0  ;;  %2632 = vmatprep.subr.bf16.mxu0 %v2957_v2 }
 0x370   :  { %727 = vmatprep.mubr.f32.mxu0 %v557_v46  ;;  %v2639_v46 = vpack.c.bf16 %v3778_v4, %v3779_v34 }
 0x371   :  { %728 = vmatmul.mubr.f32.gmra.mrb[8].mxu0 %v555_v31  ;;  %v3519_v31 = vpop.permute.xlu0 %1217 }
 0x372   :  { %2634 = vmatpush3.bf16.msra.mxu0 %v2633_v14  ;;  %2450 = vmatprep.mubr.msk.f32.mxu0 %vm2964_vm0, %v3780_v5  ;;  %vm836_vm0 = vcmask 130048  }
 0x373   :  { %2635 = vmatprep.subr.bf16.mxu0 %v2957_v2  ;;  %2415 = vmatprep.mubr.msk.f32.mxu1 %vm836_vm0, %v3530_v40 }
 0x376   :  { %2637 = vmatpush3.bf16.msra.mxu0 %v2636_v9 }
 0x377   :  { %2638 = vmatprep.subr.bf16.mxu0 %v2957_v2 }
 0x37a   :  { %2640 = vmatpush3.bf16.msra.mxu0 %v2639_v46 }
 0x37b   :  { %2448 = vmatprep.subr.mxu0 %v3780_v5 }
 0x37e   :  { %2449 = vmatpush3.msra.mxu0 %v3519_v31 }
 0x37f   :  { %2451 = vmatmul.mubr.msk.f32.vlgmr.msra.gmra.mrb[10].mxu0 %vm185_vm9, %v3093_v62 }
 0x380   :  { %2471 = vmatprep.mubr.msk.f32.mxu0 %vm185_vm9, %v3145_v49 }
 0x43f   :  { %v2410_v2 = vpop.f32.mrb[4].mxu1 }
 0x440   :  { %v2265_v41 = vpop.f32.mrb[6].mxu0  ;;  %v799_v14 = vpop.f32.mrb[5].mxu1 }
 0x441   :  { %v2266_v9 = vpop.f32.mrb[7].mxu0 }
 0x442   :  { %v2267_v46 = vadd.f32 %v2266_v9, %v2265_v41 }
 0x444   :  { %v2268_v4 = vpop.f32.mrb[8].mxu0  ;;  %v725_v34 = vadd.f32 %v2267_v46, %v3377_v59  ;;  %v3806_v46 = vunpack.i.h.bf16 %v3445_v38 }
 0x445   :  { %v2269_v5 = vpop.f32.mrb[9].mxu0 }
 0x446   :  { %v2270_v7 = vadd.f32 %v2269_v5, %v2268_v4  ;;  %v800_v49 = vadd.f32 %v799_v14, %v725_v34 }
 0x448   :  { %v730_v54 = vadd.f32 %v2270_v7, %v3355_v43  ;;  %v2169_v26 = vmul.f32 -1.442695, %v800_v49  ;;  %v3541_v43 = vld [vmem:[%s3768_s7 + $0x8] sm:$0xff]  ;;  %v3802_v7 = vunpack.i.h.bf16 %v3426_v24 }
 0x44a   :  { %v805_v0 = vadd.f32 %v2410_v2, %v730_v54  ;;  %2896 = vpow2.f32 %v2169_v26  ;;  %v3572_v2 = vld [vmem:[%s3770_s9] sm:$0xff] }
 0x44c   :  { %v2170_v21 = vmul.f32 -1.442695, %v805_v0 }
 0x44e   :  { %2898 = vpow2.f32 %v2170_v21  ;;  %v3801_v21 = vunpack.i.l.bf16 %v3414_v18 }
 0x452   :  { %v3536_v56 = vpop.f32.mrb[10].mxu0 }
 0x453   :  { %v2452_v40 = vpop.f32.mrb[11].mxu0 }
 0x454   :  { %v2897_v19 = vpop.eup %2896 }
 0x455   :  { %v814_v10 = vadd.f32 1.0, %v2897_v19  ;;  %v3800_v19 = vunpack.i.h.bf16 %v3414_v18  ;;  %v3804_v18 = vunpack.i.h.bf16 %v3443_v35 }
 0x457   :  { %2900 = vrcp.f32 %v814_v10  ;;  %v3553_v10 = vld [vmem:[%s3769_s10 + $0x8] sm:$0xff]  ;;  %v1154_v26 = vsel %vm100_vm3, %v3801_v21, %v3800_v19 }
 0x458   :  { %v2899_v8 = vpop.eup %2898 }
 0x459   :  { %v815_v41 = vadd.f32 1.0, %v2899_v8  ;;  %v3548_v8 = vld [vmem:[%s3769_s10] sm:$0xff] }
 0x45b   :  { %2902 = vrcp.f32 %v815_v41 }
 0x461   :  { %v2901_v59 = vpop.eup %2900 }
 0x462   :  { %v820_v5 = vmul.f32 %v2901_v59, %v800_v49  ;;  %v3807_v49 = vunpack.i.l.bf16 %v3445_v38 }
 0x464   :  { %v1187_v41 = vsel %vm136_vm4, %v3807_v49, %v3806_v46 }
 0x465   :  { %v2903_v9 = vpop.eup %2902 }
 0x466   :  { %v821_v34 = vmul.f32 %v2903_v9, %v805_v0  ;;  %v3803_v0 = vunpack.i.l.bf16 %v3426_v24  ;;  %v3805_v24 = vunpack.i.l.bf16 %v3443_v35 }
 0x468   :  { %v2601_v4 = vpack.c.bf16 %v821_v34, %v820_v5  ;;  %v1165_v54 = vsel %vm112_vm2, %v3803_v0, %v3802_v7  ;;  %v1176_v14 = vsel %vm124_vm5, %v3805_v24, %v3804_v18 }
 0x469   :  { %v2617_v40 = vpack.c.bf16 %v1165_v54, %v1154_v26  ;;  %v2621_v59 = vpack.c.bf16 %v1187_v41, %v1176_v14  ;;  %v3808_v14 = vunpack.i.h.bf16 %v3399_v63  ;;  %v3597_v41 = vld [vmem:[%s3770_s9 + $0x8] sm:$0xff] }
 0x46a   :  { %2602 = vmatprep.subr.bf16.mxu1 %v2601_v4 }
 0x46b   :  { %2604 = vmatpush3.bf16.msra.mxu1 %v2601_v4 }
 0x46c   :  { %2606 = vmatprep.subr.bf16.mxu1 %v2601_v4 }
 0x46e   :  { %2416 = vmatmul.mubr.msk.f32.vlgmr.msra.gmra.mrb[6].mxu1 %vm836_vm0, %v3541_v43 }
 0x46f   :  { %2608 = vmatpush3.bf16.msra.mxu1 %v2601_v4  ;;  %2422 = vmatprep.mubr.msk.f32.mxu1 %vm836_vm0, %v3548_v8 }
 0x472   :  { %2423 = vmatmul.mubr.msk.f32.vlgmr.msra.gmra.mrb[8].mxu1 %vm836_vm0, %v3553_v10 }
 0x473   :  { %2429 = vmatprep.mubr.msk.f32.mxu1 %vm836_vm0, %v3572_v2 }
 0x541   :  { %v2417_v9 = vpop.f32.mrb[6].mxu1 }
 0x542   :  { %v915_v5 = vadd.f32 %v2417_v9, %v3397_v6  ;;  %v909_v34 = vpop.f32.mrb[7].mxu1  ;;  %v3809_v6 = vunpack.i.l.bf16 %v3399_v63  ;;  %v2615_v9 = vpack.c.bf16 %v3422_v20, %v3196_v57  ;;  %v1192_v63 = vpop.permute.xlu1 %1191  ;;  %v3814_v20 = vpack.c.bf16 %v3439_v32, %v3433_v27 }
 0x543   :  { %v910_v4 = vadd.f32 %v909_v34, %v3375_v58  ;;  %v3810_v34 = vmov 0.0  }
 0x544   :  { %v2174_v19 = vmul.f32 -1.442695, %v915_v5  ;;  %v1143_v58 = vsel %vm88_vm1, %v3809_v6, %v3808_v14 }
 0x545   :  { %v2173_v21 = vmul.f32 -1.442695, %v910_v4  ;;  %v2613_v49 = vpack.c.bf16 %v1143_v58, %v3177_v53  ;;  %v3811_v53 = vunpack.i.h.bf16 %v3503_v42 }
 0x546   :  { %2904 = vpow2.f32 %v2174_v19  ;;  %v3812_v19 = vunpack.i.h.bf16 %v3480_v11 }
 0x547   :  { %2906 = vpow2.f32 %v2173_v21  ;;  %v3813_v21 = vunpack.i.l.bf16 %v3480_v11 }
 0x549   :  { %v1209_v57 = vsel %vm160_vm6, %v3813_v21, %v3812_v19 }
 0x550   :  { %v2905_v35 = vpop.eup %2904 }
 0x551   :  { %v2907_v26 = vpop.eup %2906  ;;  %v925_v7 = vadd.f32 1.0, %v2905_v35 }
 0x552   :  { %v924_v0 = vadd.f32 1.0, %v2907_v26  ;;  %v1216_v26 = vpop.permute.xlu1 %1215 }
 0x553   :  { %2908 = vrcp.f32 %v925_v7  ;;  %v1220_v11 = vsel %vm172_vm8, %v1216_v26, %v3519_v31 }
 0x554   :  { %2910 = vrcp.f32 %v924_v0 }
 0x556   :  { %v1214_v0 = vpop.permute.xlu1 %1213 }
 0x557   :  { %v1219_v27 = vsel %vm172_vm8, %v1214_v0, %v1216_v26 }
 0x55d   :  { %v2909_v38 = vpop.eup %2908 }
 0x55e   :  { %v2911_v54 = vpop.eup %2910  ;;  %v931_v18 = vmul.f32 %v2909_v38, %v915_v5  ;;  %v2842_v5 = vunpack.i.l.bf16 %v3503_v42  ;;  %v3815_v42 = vpack.c.bf16 %v3476_v3, %v3471_v1  ;;  %v1229_v3 = vpop.permute.xlu0 %1228 }
 0x55f   :  { %v930_v24 = vmul.f32 %v2911_v54, %v910_v4 }
 0x560   :  { %v1198_v4 = vsel %vm148_vm7, %v2842_v5, %v3811_v53  ;;  %v1197_v7 = vsel %vm148_vm7, %v1192_v63, %v2842_v5 }
 0x561   :  { %v2609_v46 = vpack.c.bf16 %v931_v18, %v930_v24  ;;  %v2625_v35 = vpack.c.bf16 %v1209_v57, %v1198_v4 }
 0x563   :  { %2610 = vmatprep.subr.bf16.mxu1 %v2609_v46 }
 0x564   :  { %2612 = vmatpush3.bf16.msra.mxu1 %v2609_v46 }
 0x565   :  { %2614 = vmatprep.subr.bf16.mxu1 %v2613_v49 }
 0x567   :  { %2430 = vmatmul.mubr.msk.f32.vlgmr.msra.gmra.mrb[8].mxu1 %vm836_vm0, %v3597_v41 }
 0x568   :  { %2616 = vmatpush1.bf16.msra.mxu1 %v2615_v9  ;;  %1298 = vmatprep.mubr.f32.mxu1 %v3810_v34 }
 0x569   :  { %2618 = vmatprep.subr.bf16.mxu1 %v2617_v40  ;;  %v2627_v40 = vpack.c.bf16 %v3486_v25, %v1197_v7  ;;  %v1372_v25 = vadd.f32 %v3536_v56, %v1229_v3 }
 0x56c   :  { %2620 = vmatpush1.bf16.msra.mxu1 %v3814_v20 }
 0x56d   :  { %2622 = vmatprep.subr.bf16.mxu1 %v2621_v59  ;;  %v2188_v59 = vmul.f32 -1.442695, %v1372_v25 }
 0x56f   :  { %2912 = vpow2.f32 %v2188_v59 }
 0x570   :  { %2624 = vmatpush1.bf16.msra.mxu1 %v3815_v42 }
 0x571   :  { %2626 = vmatprep.subr.bf16.mxu1 %v2625_v35 }
 0x574   :  { %2628 = vmatpush1.bf16.msra.mxu1 %v2627_v40  ;;  %v1098_v40 = vld [vmem:[%s3771_s11] sm:$0xff] }
 0x575   :  { %1250 = vmatprep.subr.mxu1 %v1220_v11  ;;  %v1099_v11 = vld [vmem:[%s3771_s11 + $0x8] sm:$0xff] }
 0x578   :  { %1251 = vmatpush1.msra.mxu1 %v1219_v27 }
 0x579   :  { %2184 = vmatmul.mubr.msk.f32.vlgmr.msra.gmra.mrb[10].mxu1 %vm185_vm9, %v3093_v62  ;;  %v2913_v62 = vpop.eup %2912 }
 0x57a   :  { %1575 = vmatprep.mubr.f32.mxu1 %v3810_v34  ;;  %v1386_v6 = vadd.f32 1.0, %v2913_v62 }
 0x63a   :  { %v3627_v32 = vpop.f32.mrb[8].mxu1 }
 0x63b   :  { %v3629_v1 = vpop.f32.mrb[9].mxu1 }
 0x64c   :  { %v1300_v31 = vpop.f32.mrb[10].mxu1 }
 0x64d   :  { %v1301_v38 = vadd.f32 %v1300_v31, %v1229_v3  ;;  %v1302_v54 = vpop.f32.mrb[11].mxu1 }
 0x64e   :  { %v1303_v18 = vadd.f32 %v1302_v54, %v1229_v3 }
 0x64f   :  { %v2186_v24 = vmul.f32 -1.442695, %v1301_v38 }
 0x650   :  { %v2187_v14 = vmul.f32 -1.442695, %v1303_v18 }
 0x651   :  { %2914 = vpow2.f32 %v2186_v24 }
 0x652   :  { %2916 = vpow2.f32 %v2187_v14 }
 0x653   :  { %2918 = vrcp.f32 %v1386_v6 }
 0x65b   :  { %v2915_v58 = vpop.eup %2914 }
 0x65c   :  { %v2917_v46 = vpop.eup %2916  ;;  %v1384_v49 = vadd.f32 1.0, %v2915_v58 }
 0x65d   :  { %v1385_v9 = vadd.f32 1.0, %v2917_v46  ;;  %v2919_v56 = vpop.eup %2918 }
 0x65e   :  { %2920 = vrcp.f32 %v1384_v49  ;;  %v1395_v19 = vmul.f32 %v2919_v56, %v1372_v25 }
 0x65f   :  { %2922 = vrcp.f32 %v1385_v9 }
 0x660   :  { %v1398_v20 = vmul.f32 %v1395_v19, %v3110_v39 }
 0x668   :  { %v2921_v5 = vpop.eup %2920 }
 0x669   :  { %v2923_v63 = vpop.eup %2922  ;;  %v1393_v53 = vmul.f32 %v2921_v5, %v1301_v38 }
 0x66a   :  { %v1394_v4 = vmul.f32 %v2923_v63, %v1303_v18 }
 0x66b   :  { %v1396_v21 = vmul.f32 %v1393_v53, %v3105_v30 }
 0x66c   :  { %v1397_v57 = vmul.f32 %v1394_v4, %v3107_v33 }
 0x66d   :  { %1402 = vrot.lane.b32.xlu1 %v1396_v21, %s2969_s21 }
 0x66e   :  { %1404 = vrot.lane.b32.xlu0 %v1397_v57, %s2969_s21 }
 0x671   :  { %1406 = vrot.lane.b32.xlu1 %v1398_v20, %s2969_s21 }
 0x6df   :  { %v3638_v35 = vpop.permute.xlu1 %1402 }
 0x6e0   :  { %v1413_v26 = vsel %vm379_vm10, 0.0, %v3638_v35  ;;  %v1405_v33 = vpop.permute.xlu0 %1404 }
 0x6e1   :  { %1426 = vrot.lane.b32.xlu0 %v1413_v26, %s2958_s25  ;;  %1415 = vrot.lane.b32.xlu1 %v1413_v26, %s2959_s26  ;;  %v1408_v39 = vsel %vm379_vm10, %v3638_v35, %v1405_v33 }
 0x6e3   :  { %v1407_v30 = vpop.permute.xlu1 %1406 }
 0x6e4   :  { %v1409_v7 = vsel %vm379_vm10, %v1405_v33, %v1407_v30 }
 0x6e5   :  { %1448 = vrot.lane.b32.xlu0 %v1413_v26, %s2962_s13  ;;  %1437 = vrot.lane.b32.xlu1 %v1413_v26, %s2960_s29  ;;  %v2859_v42 = vpack.i.bf16 %v1409_v7, %v1408_v39 }
 0x6e9   :  { %1470 = vrot.lane.b32.xlu0 %v1413_v26, %s2966_s15  ;;  %1459 = vrot.lane.b32.xlu1 %v1413_v26, %s2961_s30 }
 0x6ed   :  { %2860 = vrot.lane.b32.xlu1 %v2859_v42, %s2960_s29  ;;  %2850 = vrot.lane.b32.xlu0 %v2859_v42, %s2959_s26 }
 0x6f1   :  { %2870 = vrot.lane.b32.xlu1 %v2859_v42, %s2961_s30  ;;  %2855 = vrot.lane.b32.xlu0 %v2859_v42, %s2958_s25 }
 0x6f5   :  { %2880 = vrot.lane.b32.xlu1 %v2859_v42, %s2965_s14  ;;  %2865 = vrot.lane.b32.xlu0 %v2859_v42, %s2962_s13 }
 0x6f9   :  { %1481 = vrot.lane.b32.xlu1 %v1413_v26, %s2965_s14  ;;  %2875 = vrot.lane.b32.xlu0 %v2859_v42, %s2966_s15 }
 0x6fd   :  { %1496 = vrot.lane.b32.xlu1 %v1409_v7, %s2968_s16  ;;  %1494 = vrot.lane.b32.xlu0 %v1408_v39, %s2968_s16 }
 0x701   :  { %1667 = vperm.xlu1 %2777, %v3170_v52   ;;  %1492 = vrot.lane.b32.xlu0 %v1413_v26, %s2968_s16 }
 0x705   :  { %1851 = vperm.xlu1 %2777, %v3165_v51   ;;  %1672 = vperm.xlu0 %2813, %v3159_v50  }
 0x709   :  { %1102 = vperm.xlu1 %2777, %v1098_v40   ;;  %1856 = vperm.xlu0 %2813, %v3187_v55  }
 0x70d   :  { %2124 = vperm.xlu1 %2777, %v1098_v40   ;;  %1107 = vperm.xlu0 %2813, %v1099_v11  }
 0x711   :  { %2129 = vperm.xlu0 %2813, %v1099_v11  }
 0x753   :  { %v1427_v52 = vpop.permute.xlu0 %1426  ;;  %v1416_v0 = vpop.permute.xlu1 %1415 }
 0x757   :  { %v1449_v27 = vpop.permute.xlu0 %1448  ;;  %v1438_v51 = vpop.permute.xlu1 %1437 }
 0x75b   :  { %v1471_v3 = vpop.permute.xlu0 %1470  ;;  %v1460_v50 = vpop.permute.xlu1 %1459 }
 0x75f   :  { %v2851_v25 = vpop.permute.xlu0 %2850  ;;  %v2861_v59 = vpop.permute.xlu1 %2860 }
 0x760   :  { %v2853_v31 = vunpack.i.h.bf16 %v2851_v25  ;;  %v2852_v38 = vunpack.i.l.bf16 %v2851_v25  ;;  %v2863_v54 = vunpack.i.h.bf16 %v2861_v59  ;;  %v2862_v18 = vunpack.i.l.bf16 %v2861_v59 }
 0x762   :  { %v2658_v55 = vpack.c.bf16 %v2853_v31, %v1409_v7  ;;  %v1421_v24 = vsel %vm88_vm1, %v1416_v0, %v2852_v38  ;;  %v1422_v14 = vsel %vm88_vm1, %v2852_v38, %v2853_v31  ;;  %v1443_v56 = vsel %vm112_vm2, %v1438_v51, %v2862_v18 }
 0x763   :  { %v2643_v62 = vpack.c.bf16 %v1421_v24, %v3638_v35  ;;  %v2856_v6 = vpop.permute.xlu0 %2855  ;;  %v2871_v58 = vpop.permute.xlu1 %2870  ;;  %v2641_v46 = vpack.c.bf16 %v1422_v14, %v1408_v39  ;;  %v1444_v63 = vsel %vm112_vm2, %v2862_v18, %v2863_v54  ;;  %vm1126_vm1 = vcmask 523264  }
 0x764   :  { %v2858_v49 = vunpack.i.h.bf16 %v2856_v6  ;;  %v2857_v9 = vunpack.i.l.bf16 %v2856_v6  ;;  %2659 = vmatprep.subr.bf16.mxu0 %v2658_v55  ;;  %v2872_v5 = vunpack.i.l.bf16 %v2871_v58  ;;  %v2873_v19 = vunpack.i.h.bf16 %v2871_v58 }
 0x765   :  { %2642 = vmatprep.subr.bf16.mxu1 %v2641_v46  ;;  %2661 = vmatpush3.bf16.msra.mxu0 %v2658_v55 }
 0x766   :  { %v1432_v53 = vsel %vm100_vm3, %v1427_v52, %v2857_v9  ;;  %v2662_v4 = vpack.c.bf16 %v2863_v54, %v2858_v49  ;;  %2645 = vmatpush1.bf16.msk.msra.mxu1 %vm3232_vm13, %v2643_v62  ;;  %v1433_v21 = vsel %vm100_vm3, %v2857_v9, %v2858_v49  ;;  %v1465_v7 = vsel %vm136_vm4, %v1460_v50, %v2872_v5  ;;  %v2956_v49 = vld [vmem:[%s3764_s5] sm:$0xff] }
 0x767   :  { %v2648_v57 = vpack.c.bf16 %v1443_v56, %v1432_v53  ;;  %v2866_v20 = vpop.permute.xlu0 %2865  ;;  %v2881_v35 = vpop.permute.xlu1 %2880  ;;  %v2646_v26 = vpack.c.bf16 %v1444_v63, %v1433_v21  ;;  %v1466_v52 = vsel %vm136_vm4, %v2872_v5, %v2873_v19 }
 0x768   :  { %v2868_v30 = vunpack.i.h.bf16 %v2866_v20  ;;  %v2867_v33 = vunpack.i.l.bf16 %v2866_v20  ;;  %2663 = vmatprep.subr.bf16.mxu0 %v2662_v4  ;;  %v2883_v39 = vunpack.i.h.bf16 %v2881_v35  ;;  %v2882_v42 = vunpack.i.l.bf16 %v2881_v35 }
 0x769   :  { %2647 = vmatprep.subr.bf16.mxu1 %v2646_v26  ;;  %2665 = vmatpush3.bf16.msra.mxu0 %v2662_v4 }
 0x76a   :  { %v1454_v40 = vsel %vm124_vm5, %v1449_v27, %v2867_v33  ;;  %v2666_v11 = vpack.c.bf16 %v2873_v19, %v2868_v30  ;;  %2649 = vmatpush1.bf16.msra.mxu1 %v2648_v57  ;;  %v1455_v16 = vsel %vm124_vm5, %v2867_v33, %v2868_v30  ;;  %v1488_v50 = vsel %vm160_vm6, %v2882_v42, %v2883_v39  ;;  %v3819_v19 = vld [vmem:[#allocation5_spill] sm:$0xff] }
 0x76b   :  { %v2652_v0 = vpack.c.bf16 %v1465_v7, %v1454_v40  ;;  %v2876_v51 = vpop.permute.xlu0 %2875  ;;  %v1482_v25 = vpop.permute.xlu1 %1481  ;;  %v2650_v59 = vpack.c.bf16 %v1466_v52, %v1455_v16 }
 0x76c   :  { %v2878_v31 = vunpack.i.h.bf16 %v2876_v51  ;;  %v2877_v38 = vunpack.i.l.bf16 %v2876_v51  ;;  %2667 = vmatprep.subr.bf16.mxu0 %v2666_v11  ;;  %v1487_v18 = vsel %vm160_vm6, %v1482_v25, %v2882_v42 }
 0x76d   :  { %2651 = vmatprep.subr.bf16.mxu1 %v2650_v59  ;;  %2669 = vmatpush3.bf16.msra.mxu0 %v2666_v11 }
 0x76e   :  { %v2670_v54 = vpack.c.bf16 %v2883_v39, %v2878_v31  ;;  %v1476_v27 = vsel %vm148_vm7, %v1471_v3, %v2877_v38  ;;  %2653 = vmatpush1.bf16.msra.mxu1 %v2652_v0  ;;  %v1477_v55 = vsel %vm148_vm7, %v2877_v38, %v2878_v31 }
 0x76f   :  { %v2656_v24 = vpack.c.bf16 %v1487_v18, %v1476_v27  ;;  %v1495_v14 = vpop.permute.xlu0 %1494  ;;  %v1497_v62 = vpop.permute.xlu1 %1496  ;;  %v2654_v6 = vpack.c.bf16 %v1488_v50, %v1477_v55 }
 0x770   :  { %2671 = vmatprep.subr.bf16.mxu0 %v2670_v54  ;;  %v1499_v58 = vsel %vm172_vm8, %v1495_v14, %v1497_v62 }
 0x771   :  { %2655 = vmatprep.subr.bf16.mxu1 %v2654_v6  ;;  %2673 = vmatpush3.bf16.msra.mxu0 %v2670_v54 }
 0x772   :  { %2657 = vmatpush1.bf16.msra.mxu1 %v2656_v24  ;;  %2469 = vmatprep.subr.mxu0 %v1497_v62 }
 0x773   :  { %v1493_v46 = vpop.permute.xlu0 %1492  ;;  %1527 = vmatprep.subr.mxu1 %v1499_v58 }
 0x774   :  { %v1498_v3 = vsel %vm172_vm8, %v1493_v46, %v1495_v14 }
 0x775   :  { %2470 = vmatpush3.msra.mxu0 %v1497_v62 }
 0x776   :  { %1528 = vmatpush1.msra.mxu1 %v1498_v3  ;;  %2472 = vmatmul.mubr.msk.f32.vlgmr.msra.gmra.mrb[12].mxu0 %vm185_vm9, %v3272_v12 }
 0x777   :  { %2191 = vmatmul.mubr.msk.f32.vlgmr.msra.gmra.mrb[12].mxu1 %vm185_vm9, %v2956_v49  ;;  %2675 = vmatprep.subr.bf16.mxu1 %v3274_v13 }
 0x778   :  { %1581 = vmatprep.mubr.f32.mxu1 %v3810_v34  ;;  %2677 = vmatpush3.bf16.msra.mxu1 %v3277_v15 }
 0x779   :  { %2679 = vmatprep.subr.bf16.mxu1 %v3279_v17  ;;  %2708 = vmatprep.subr.msk.bf16.mxu0 %vm3458_vm15, %v3455_v47 }
 0x77a   :  { %2711 = vmatpush3.bf16.msk.msra.mxu0 %vm3458_vm15, %v3455_v47 }
 0x77b   :  { %2192 = vmatmul.mubr.msk.f32.gmra.mrb[14].mxu1 %vm185_vm9, %v3272_v12 }
 0x77c   :  { %2681 = vmatpush3.bf16.msra.mxu1 %v3300_v22 }
 0x77d   :  { %2683 = vmatprep.subr.bf16.mxu1 %v3303_v23 }
 0x780   :  { %v1668_v13 = vpop.permute.xlu1 %1667  ;;  %2685 = vmatpush3.bf16.msra.mxu1 %v3320_v28 }
 0x781   :  { %2687 = vmatprep.subr.bf16.mxu1 %v3323_v29 }
 0x784   :  { %v1673_v15 = vpop.permute.xlu0 %1672  ;;  %v3713_v17 = vpop.permute.xlu1 %1851  ;;  %2689 = vmatpush3.bf16.msra.mxu1 %v3338_v36  ;;  %v3816_v36 = vld [vmem:[#allocation2_spill] sm:$0xff] }
 0x785   :  { %2691 = vmatprep.subr.bf16.mxu1 %v3341_v37  ;;  %v3817_v37 = vld [vmem:[#allocation3_spill] sm:$0xff] }
 0x788   :  { %v3717_v47 = vpop.permute.xlu0 %1856  ;;  %v1103_v48 = vpop.permute.xlu1 %1102  ;;  %2693 = vmatpush3.bf16.msra.mxu1 %v3358_v44  ;;  %v3818_v44 = vld [vmem:[#allocation4_spill] sm:$0xff] }
 0x789   :  { %v1110_v12 = vadd.f32 %v1103_v48, %v3629_v1  ;;  %2695 = vmatprep.subr.bf16.mxu1 %v3361_v45 }
 0x78b   :  { %v2179_v22 = vmul.f32 -1.442695, %v1110_v12 }
 0x78c   :  { %v1108_v23 = vpop.permute.xlu0 %1107  ;;  %2697 = vmatpush3.bf16.msra.mxu1 %v3380_v60 }
 0x78d   :  { %2924 = vpow2.f32 %v2179_v22  ;;  %v1111_v28 = vadd.f32 %v3627_v32, %v1108_v23  ;;  %2699 = vmatprep.subr.bf16.mxu1 %v3383_v61 }
 0x78f   :  { %v2180_v29 = vmul.f32 -1.442695, %v1111_v28 }
 0x790   :  { %2701 = vmatpush3.bf16.msra.mxu1 %v3816_v36 }
 0x791   :  { %2926 = vpow2.f32 %v2180_v29  ;;  %2703 = vmatprep.subr.bf16.mxu1 %v3817_v37 }
 0x794   :  { %2705 = vmatpush3.bf16.msra.mxu1 %v3818_v44 }
 0x797   :  { %v2925_v34 = vpop.eup %2924 }
 0x798   :  { %v1118_v1 = vadd.f32 1.0, %v2925_v34 }
 0x79a   :  { %2928 = vrcp.f32 %v1118_v1 }
 0x79b   :  { %v2927_v45 = vpop.eup %2926 }
 0x79c   :  { %v1119_v9 = vadd.f32 1.0, %v2927_v45 }
 0x79e   :  { %2930 = vrcp.f32 %v1119_v9 }
 0x7a4   :  { %v2929_v60 = vpop.eup %2928 }
 0x7a5   :  { %v1124_v56 = vmul.f32 %v2929_v60, %v1110_v12  ;;  %v2125_v12 = vpop.permute.xlu1 %2124 }
 0x7a7   :  { %1127 = vst.msk [vmem:[%s3772_s12] sm:$0xff] %vm1126_vm1, %v1124_v56 }
 0x7a8   :  { %v2931_v61 = vpop.eup %2930 }
 0x7a9   :  { %v1125_v32 = vmul.f32 %v2931_v61, %v1111_v28 }
 0x7ab   :  { %1128 = vst.msk [vmem:[%s3772_s12 + $0x8] sm:$0xff] %vm1126_vm1, %v1125_v32 }
 0x849   :  { %v2473_v5 = vpop.f32.mrb[12].mxu0 }
 0x84a   :  { %v1577_v63 = vpop.f32.mrb[12].mxu1  ;;  %v1654_v53 = vpop.f32.mrb[13].mxu0 }
 0x84b   :  { %v1579_v4 = vpop.f32.mrb[13].mxu1  ;;  %2478 = vmatprep.mubr.msk.f32.mxu0 %vm647_vm11, %v1654_v53 }
 0x84c   :  { %1745 = vmatprep.mubr.f32.mxu1 %v1579_v4  ;;  %2479 = vmatmul.mubr.msk.f32.vlgmr.msra.gmra.mrb[14].mxu0 %vm647_vm11, %v2473_v5 }
 0x84d   :  { %1746 = vmatmul.mubr.f32.vlgmr.msra.gmra.mrb[16].mxu1 %v1577_v63  ;;  %2485 = vmatprep.mubr.msk.f32.mxu0 %vm836_vm0, %v3819_v19 }
 0x84e   :  { %v1583_v21 = vpop.f32.mrb[14].mxu1 }
 0x84f   :  { %v1585_v57 = vpop.f32.mrb[15].mxu1 }
 0x850   :  { %1750 = vmatprep.mubr.f32.mxu1 %v1585_v57 }
 0x851   :  { %1751 = vmatmul.mubr.f32.gmra.mrb[18].mxu1 %v1583_v21 }
 0x91f   :  { %v2480_v20 = vpop.f32.mrb[14].mxu0 }
 0x920   :  { %v2340_v35 = vpop.f32.mrb[16].mxu1  ;;  %v1822_v26 = vpop.f32.mrb[15].mxu0 }
 0x921   :  { %v2341_v30 = vpop.f32.mrb[17].mxu1 }
 0x922   :  { %v2342_v33 = vadd.f32 %v2341_v30, %v2340_v35 }
 0x924   :  { %v2343_v7 = vpop.f32.mrb[18].mxu1  ;;  %v1748_v39 = vadd.f32 %v2342_v33, %v1668_v13 }
 0x925   :  { %v2344_v42 = vpop.f32.mrb[19].mxu1 }
 0x926   :  { %v2345_v40 = vadd.f32 %v2344_v42, %v2343_v7  ;;  %v1823_v11 = vadd.f32 %v1822_v26, %v1748_v39 }
 0x928   :  { %v1753_v16 = vadd.f32 %v2345_v40, %v1673_v15  ;;  %v2198_v52 = vmul.f32 -1.442695, %v1823_v11 }
 0x92a   :  { %v1828_v0 = vadd.f32 %v2480_v20, %v1753_v16  ;;  %2932 = vpow2.f32 %v2198_v52 }
 0x92c   :  { %v2199_v51 = vmul.f32 -1.442695, %v1828_v0 }
 0x92e   :  { %2934 = vpow2.f32 %v2199_v51 }
 0x934   :  { %v2933_v25 = vpop.eup %2932 }
 0x935   :  { %v1837_v59 = vadd.f32 1.0, %v2933_v25 }
 0x937   :  { %2936 = vrcp.f32 %v1837_v59 }
 0x938   :  { %v2935_v31 = vpop.eup %2934 }
 0x939   :  { %v1838_v38 = vadd.f32 1.0, %v2935_v31 }
 0x93b   :  { %2938 = vrcp.f32 %v1838_v38 }
 0x941   :  { %v2937_v50 = vpop.eup %2936 }
 0x942   :  { %v1843_v27 = vmul.f32 %v2937_v50, %v1823_v11 }
 0x945   :  { %v2939_v54 = vpop.eup %2938 }
 0x946   :  { %v1844_v18 = vmul.f32 %v2939_v54, %v1828_v0 }
 0x948   :  { %v2712_v55 = vpack.c.bf16 %v1844_v18, %v1843_v27 }
 0x94a   :  { %2713 = vmatprep.subr.bf16.mxu0 %v2712_v55 }
 0x94b   :  { %2715 = vmatpush3.bf16.msra.mxu0 %v2712_v55 }
 0x94c   :  { %2717 = vmatprep.subr.bf16.mxu0 %v2712_v55 }
 0x94e   :  { %2486 = vmatmul.mubr.msk.f32.vlgmr.msra.gmra.mrb[16].mxu0 %vm836_vm0, %v3541_v43 }
 0x94f   :  { %2719 = vmatpush3.bf16.msra.mxu0 %v2712_v55  ;;  %2492 = vmatprep.mubr.msk.f32.mxu0 %vm836_vm0, %v3548_v8 }
 0x952   :  { %2493 = vmatmul.mubr.msk.f32.vlgmr.msra.gmra.mrb[18].mxu0 %vm836_vm0, %v3553_v10 }
 0x953   :  { %2499 = vmatprep.mubr.msk.f32.mxu0 %vm836_vm0, %v3572_v2 }
 0xa21   :  { %v2487_v24 = vpop.f32.mrb[16].mxu0 }
 0xa22   :  { %v1937_v14 = vadd.f32 %v2487_v24, %v3717_v47  ;;  %v1931_v62 = vpop.f32.mrb[17].mxu0 }
 0xa23   :  { %v1932_v6 = vadd.f32 %v1931_v62, %v3713_v17  ;;  %v2130_v17 = vpop.permute.xlu0 %2129 }
 0xa24   :  { %v2203_v58 = vmul.f32 -1.442695, %v1937_v14 }
 0xa25   :  { %v2202_v46 = vmul.f32 -1.442695, %v1932_v6 }
 0xa26   :  { %2940 = vpow2.f32 %v2203_v58 }
 0xa27   :  { %2942 = vpow2.f32 %v2202_v46 }
 0xa30   :  { %v2941_v43 = vpop.eup %2940 }
 0xa31   :  { %v2943_v3 = vpop.eup %2942  ;;  %v1947_v49 = vadd.f32 1.0, %v2941_v43 }
 0xa32   :  { %v1946_v8 = vadd.f32 1.0, %v2943_v3 }
 0xa33   :  { %2944 = vrcp.f32 %v1947_v49 }
 0xa34   :  { %2946 = vrcp.f32 %v1946_v8 }
 0xa3d   :  { %v2945_v10 = vpop.eup %2944 }
 0xa3e   :  { %v2947_v13 = vpop.eup %2946  ;;  %v1953_v15 = vmul.f32 %v2945_v10, %v1937_v14 }
 0xa3f   :  { %v1952_v2 = vmul.f32 %v2947_v13, %v1932_v6 }
 0xa41   :  { %v2720_v48 = vpack.c.bf16 %v1953_v15, %v1952_v2 }
 0xa43   :  { %2721 = vmatprep.subr.bf16.mxu0 %v2720_v48 }
 0xa44   :  { %2723 = vmatpush3.bf16.msra.mxu0 %v2720_v48 }
 0xa47   :  { %2500 = vmatmul.mubr.msk.f32.vlgmr.msra.gmra.mrb[18].mxu0 %vm836_vm0, %v3597_v41 }
 0xb1a   :  { %v2501_v47 = vpop.f32.mrb[18].mxu0 }
 0xb1b   :  { %v2133_v22 = vadd.f32 %v2501_v47, %v2130_v17  ;;  %v2111_v23 = vpop.f32.mrb[19].mxu0 }
 0xb1c   :  { %v2132_v28 = vadd.f32 %v2125_v12, %v2111_v23 }
 0xb1d   :  { %v2209_v29 = vmul.f32 -1.442695, %v2133_v22 }
 0xb1e   :  { %v2208_v36 = vmul.f32 -1.442695, %v2132_v28 }
 0xb1f   :  { %2948 = vpow2.f32 %v2209_v29 }
 0xb20   :  { %2950 = vpow2.f32 %v2208_v36 }
 0xb29   :  { %v2949_v37 = vpop.eup %2948 }
 0xb2a   :  { %v2951_v44 = vpop.eup %2950  ;;  %v2141_v34 = vadd.f32 1.0, %v2949_v37 }
 0xb2b   :  { %v2140_v1 = vadd.f32 1.0, %v2951_v44 }
 0xb2c   :  { %2952 = vrcp.f32 %v2141_v34 }
 0xb2d   :  { %2954 = vrcp.f32 %v2140_v1 }
 0xb36   :  { %v2953_v45 = vpop.eup %2952 }
 0xb37   :  { %v2955_v9 = vpop.eup %2954  ;;  %v2147_v60 = vmul.f32 %v2953_v45, %v2133_v22 }
 0xb38   :  { %v2146_v41 = vmul.f32 %v2955_v9, %v2132_v28 }
 0xb39   :  { %2211 = vst.msk [vmem:[%s3772_s12 + $0x18] sm:$0xff] %vm1126_vm1, %v2147_v60 }
 0xb3a   :  { %2210 = vst.msk [vmem:[%s3772_s12 + $0x10] sm:$0xff] %vm1126_vm1, %v2146_v41 }

</bundles_post_ra>
